<compile_context>
chip_gen: v6e
topology: v6e:2x2x1
jax: 0.10.0
libtpu: 0.0.40
codegen_flags: <defaults>
</compile_context>

<pallas_src>
import jax
import jax.numpy as jnp
from jax import lax
from jax.experimental import pallas as pl
from jax.experimental.pallas import tpu as pltpu


NUM_CLASSES = 3
HEAD_CONV = 32
# MonoFlex default regression-head grouping (name, channels); total reg = 50 channels.
REG_GROUPS = (
    (("2d_dim", 4),),
    (("3d_offset", 2), ("corner_offset", 20)),
    (("3d_dim", 3), ("ori_cls", 8), ("ori_offset", 8)),
    (("depth", 1), ("depth_uncertainty", 1), ("corner_uncertainty", 3)),
)
REG_CHANNELS = sum(ch for g in REG_GROUPS for _n, ch in g)   # 50
NUM_STEMS = 1 + len(REG_GROUPS)                              # 5 (cls + 4 reg groups)
FUSED_FEAT = NUM_STEMS * HEAD_CONV                           # 160
RAW_OUT = NUM_CLASSES + REG_CHANNELS                         # 53
PAD_OUT = 64                                                 # lane-padded per-pixel output width
TILE_H = 8                                                   # H-strip rows per grid step


# ----------------------------------------------------------------------------
# Fused Pallas kernel: 3x3 conv (BN folded) + ReLU + block-diagonal 1x1 heads
# ----------------------------------------------------------------------------
def _fused_head_kernel(x_ref, w3_ref, b3_ref, w1_ref, b1_ref, o_ref, acc_ref):
    """One (batch, H-strip) tile of the whole MonoFlex predictor head.

    x_ref  : (1, TH+2, W+2, Cin)  bf16  padded NHWC input strip (1-row halo each side)
    w3_ref : (3, 3*Cin, 160)      bf16  dy-grouped fused 3x3 stem weights (BN scale folded)
    b3_ref : (1, 160)             f32   fused stem bias (conv bias + BN shift folded)
    w1_ref : (160, 64)            bf16  block-diagonal 1x1 head weights (zero-padded cols)
    b1_ref : (1, 64)              f32   concatenated 1x1 head biases (zero-padded)
    o_ref  : (1, TH*W//2, 128)    f32   lane-dense output: row i = [pixel i | pixel i+TH*W/2]
    acc_ref: (TH*W, 160)          f32   VMEM scratch accumulator
    """
    _, hp, wp, cin = x_ref.shape
    th, w = hp - 2, wp - 2
    hw = th * w
    half = hw // 2

    # Init the accumulator with the folded (conv-bias + eval-BN) shift.
    acc_ref[...] = jnp.broadcast_to(b3_ref[...], acc_ref.shape)

    # 3x3 conv for all five stems, dy-grouped: K = 3*Cin per MXU matmul (3 matmuls, not 9).
    for dy in range(3):
        rows = x_ref[0, dy:dy + th, :, :]                               # (TH, W+2, Cin)
        xs = jnp.concatenate(
            [rows[:, dx:dx + w, :].reshape(hw, cin) for dx in range(3)], axis=-1)
        acc_ref[...] += jnp.dot(xs, w3_ref[dy], preferred_element_type=jnp.float32)

    # ReLU in f32; the 160-channel stem feature never leaves VMEM.
    feat = jnp.maximum(acc_ref[...], 0.0).astype(w1_ref.dtype)

    # All eleven 1x1 heads as a single block-diagonal matmul (53 real cols + pad).
    y = jnp.dot(feat, w1_ref[...], preferred_element_type=jnp.float32) + b1_ref[...]

    # sigmoid_hm (clamped sigmoid) on the 3 class-heatmap channels only.
    ch = lax.broadcasted_iota(jnp.int32, y.shape, 1)
    hm = jnp.clip(jax.nn.sigmoid(y), 1e-4, 1.0 - 1e-4)
    y = jnp.where(ch < NUM_CLASSES, hm, y)

    # Lane-dense store: pack two pixel rows (i and i + TH*W/2) into one 128-lane row.
    o_ref[0] = jnp.concatenate([y[:half, :], y[half:, :]], axis=-1)


# ----------------------------------------------------------------------------
# Wrapper: NCHW boundary, halo'd H-strips, single fused pallas_call
# ----------------------------------------------------------------------------
def monoflex_head_forward(features_nchw, packed_params, tile_h=TILE_H):
    """Inference-path MonoFlexPredictor. Returns {'cls': (B,3,H,W), 'reg': (B,50,H,W)}."""
    w3, b3, w1, b1 = packed_params
    B, Cin, H, W = features_nchw.shape
    th = min(tile_h, H)
    assert H % th == 0, "H must be divisible by the H-tile height"
    assert (th * W) % 16 == 0, "strip pixel count must pack into 128-lane rows"
    n_h = H // th
    half = th * W // 2

    # Boundary relayout: one transpose, cast to bf16 BEFORE padding (halves pad traffic),
    # one pad, then non-overlapping halo'd row strips so a plain BlockSpec pipelines them.
    x = jnp.transpose(features_nchw, (0, 2, 3, 1)).astype(jnp.bfloat16)     # NHWC bf16
    x = jnp.pad(x, ((0, 0), (1, 1), (1, 1), (0, 0)))                        # (B, H+2, W+2, Cin)
    strips = jnp.stack([x[:, i * th:i * th + th + 2] for i in range(n_h)], axis=1)
    strips = strips.reshape(B * n_h, th + 2, W + 2, Cin)

    out = pl.pallas_call(
        _fused_head_kernel,
        out_shape=jax.ShapeDtypeStruct((B * n_h, half, 2 * PAD_OUT), jnp.float32),
        grid_spec=pltpu.PrefetchScalarGridSpec(
            num_scalar_prefetch=0,
            grid=(B, n_h),
            in_specs=[
                pl.BlockSpec((1, th + 2, W + 2, Cin), lambda b, h: (b * n_h + h, 0, 0, 0)),
                pl.BlockSpec((3, 3 * Cin, FUSED_FEAT), lambda b, h: (0, 0, 0)),
                pl.BlockSpec((1, FUSED_FEAT), lambda b, h: (0, 0)),
                pl.BlockSpec((FUSED_FEAT, PAD_OUT), lambda b, h: (0, 0)),
                pl.BlockSpec((1, PAD_OUT), lambda b, h: (0, 0)),
            ],
            out_specs=pl.BlockSpec((1, half, 2 * PAD_OUT), lambda b, h: (b * n_h + h, 0, 0)),
            scratch_shapes=[pltpu.VMEM((th * W, FUSED_FEAT), jnp.float32)],
        ),
        compiler_params=pltpu.CompilerParams(
            dimension_semantics=("parallel", "parallel"),
            vmem_limit_bytes=48 * 1024 * 1024,   # TODO(synk): re-tune per generation / tile size
        ),
    )(strips, w3, b3, w1, b1)

    # Unpack the two-pixels-per-row lane packing, restore PyTorch NCHW, split cls / reg.
    y = out.reshape(B, n_h, half, 2, PAD_OUT)
    y = jnp.transpose(y, (0, 1, 3, 2, 4)).reshape(B, H * W, PAD_OUT)
    y = jnp.transpose(y, (0, 2, 1)).reshape(B, PAD_OUT, H, W)
    return {
        "cls": y[:, :NUM_CLASSES],                              # (B, 3, H, W)
        "reg": y[:, NUM_CLASSES:NUM_CLASSES + REG_CHANNELS],    # (B, 50, H, W)
    }


# ----------------------------------------------------------------------------
# Pure-JAX reference with identical numerics (bf16 operands, f32 accumulation)
# ----------------------------------------------------------------------------
def _reference_forward(features_nchw, packed_params):
    w3, b3, w1, b1 = packed_params
    B, Cin, H, W = features_nchw.shape
    x = jnp.transpose(features_nchw, (0, 2, 3, 1)).astype(jnp.bfloat16)
    x = jnp.pad(x, ((0, 0), (1, 1), (1, 1), (0, 0)))
    w_conv = w3.reshape(3, 3, Cin, FUSED_FEAT)                             # HWIO
    feat = lax.conv_general_dilated(
        x, w_conv, window_strides=(1, 1), padding="VALID",
        dimension_numbers=("NHWC", "HWIO", "NHWC"),
        preferred_element_type=jnp.float32)
    feat = jnp.maximum(feat + b3.reshape(1, 1, 1, -1), 0.0).astype(jnp.bfloat16)
    y = jnp.einsum("bhwf,fo->bhwo", feat, w1,
                   preferred_element_type=jnp.float32) + b1.reshape(1, 1, 1, -1)
    cls = jnp.clip(jax.nn.sigmoid(y[..., :NUM_CLASSES]), 1e-4, 1.0 - 1e-4)
    reg = y[..., NUM_CLASSES:NUM_CLASSES + REG_CHANNELS]
    return {"cls": jnp.transpose(cls, (0, 3, 1, 2)),
            "reg": jnp.transpose(reg, (0, 3, 1, 2))}


# ----------------------------------------------------------------------------
# Deterministic parameter construction + offline fusion / BN folding
# ----------------------------------------------------------------------------
def _he(key, shape, fan_in):
    return jax.random.normal(key, shape, jnp.float32) * (2.0 / fan_in) ** 0.5


def _bn_params(key, c, eps=1e-5):
    kg, kb = jax.random.split(key)
    gamma = 1.0 + 0.1 * jax.random.normal(kg, (c,), jnp.float32)
    beta = 0.05 * jax.random.normal(kb, (c,), jnp.float32)
    running_mean = jnp.zeros((c,), jnp.float32)
    running_var = jnp.ones((c,), jnp.float32)
    scale = gamma / jnp.sqrt(running_var + eps)      # eval-mode BN
    shift = beta - running_mean * scale
    return scale, shift


def init_packed_params(key, in_channels):
    """Build per-head conv/BN params (as in MonoFlexPredictor) and fuse them offline into:
       w3 (3, 3*Cin, 160) bf16, b3 (1, 160) f32 : five 3x3+BN stems, dy-grouped rows (dx*Cin+ci),
       w1 (160, 64) bf16,       b1 (1, 64)  f32 : block-diagonal 1x1 heads (53 real cols + pad).
    """
    keys = iter(jax.random.split(key, 64))
    w3 = jnp.zeros((3, 3 * in_channels, FUSED_FEAT), jnp.float32)
    b3 = jnp.zeros((FUSED_FEAT,), jnp.float32)
    w1 = jnp.zeros((FUSED_FEAT, PAD_OUT), jnp.float32)
    b1 = jnp.zeros((PAD_OUT,), jnp.float32)

    def fold_stem(wg, bg, scale, shift):
        # wg: (9, Cin, 32), tap index t = dy*3 + dx  ->  (3, 3*Cin, 32), rows dx*Cin + ci.
        wgf = (wg * scale).reshape(3, 3, in_channels, HEAD_CONV)
        wgf = wgf.reshape(3, 3 * in_channels, HEAD_CONV)
        return wgf, bg * scale + shift

    # --- class head: conv3x3+BN+ReLU stem -> conv1x1 (bias -2.19 focal prior) + sigmoid_hm ---
    wg = _he(next(keys), (9, in_channels, HEAD_CONV), 9 * in_channels)
    bg = jnp.zeros((HEAD_CONV,), jnp.float32)
    scale, shift = _bn_params(next(keys), HEAD_CONV)
    wgf, bgf = fold_stem(wg, bg, scale, shift)
    w3 = w3.at[:, :, 0:HEAD_CONV].set(wgf)
    b3 = b3.at[0:HEAD_CONV].set(bgf)
    wc = _he(next(keys), (HEAD_CONV, NUM_CLASSES), HEAD_CONV)
    w1 = w1.at[0:HEAD_CONV, 0:NUM_CLASSES].set(wc)
    b1 = b1.at[0:NUM_CLASSES].set(-2.19)

    # --- regression groups: per-group conv3x3+BN+ReLU stem, one conv1x1 per output ---
    col = NUM_CLASSES
    for gi, group in enumerate(REG_GROUPS):
        row = (gi + 1) * HEAD_CONV
        wg = _he(next(keys), (9, in_channels, HEAD_CONV), 9 * in_channels)
        bg = jnp.zeros((HEAD_CONV,), jnp.float32)
        scale, shift = _bn_params(next(keys), HEAD_CONV)
        wgf, bgf = fold_stem(wg, bg, scale, shift)
        w3 = w3.at[:, :, row:row + HEAD_CONV].set(wgf)
        b3 = b3.at[row:row + HEAD_CONV].set(bgf)
        for _name, ch in group:
            wh = _he(next(keys), (HEAD_CONV, ch), HEAD_CONV)
            w1 = w1.at[row:row + HEAD_CONV, col:col + ch].set(wh)
            col += ch
    assert col == RAW_OUT

    return (w3.astype(jnp.bfloat16), b3[None, :],
            w1.astype(jnp.bfloat16), b1[None, :])


if __name__ == "__main__":
    B, C_IN, H, W = 2, 32, 16, 16
    key = jax.random.PRNGKey(0)
    k_feat, k_param = jax.random.split(key)
    features = jax.random.normal(k_feat, (B, C_IN, H, W), jnp.float32)   # NCHW, like PyTorch
    packed = init_packed_params(k_param, C_IN)

    out = jax.jit(monoflex_head_forward)(features, packed)
    jax.block_until_ready(out)

    ref = jax.jit(_reference_forward)(features, packed)
    jax.block_until_ready(ref)

    assert out["cls"].shape == (B, NUM_CLASSES, H, W)
    assert out["reg"].shape == (B, REG_CHANNELS, H, W)
    cls_err = float(jnp.max(jnp.abs(out["cls"] - ref["cls"])))
    reg_err = float(jnp.max(jnp.abs(out["reg"] - ref["reg"])))
    assert cls_err < 5e-2, f"cls mismatch vs reference: {cls_err}"
    assert reg_err < 5e-2, f"reg mismatch vs reference: {reg_err}"
    assert bool(jnp.all(out["cls"] >= 1e-4)) and bool(jnp.all(out["cls"] <= 1.0 - 1e-4))
    assert bool(jnp.all(jnp.isfinite(out["reg"])))
    print("KERNEL_OK")
</pallas_src>

<mosaic_0001>
module attributes {stable_mosaic.version = 11 : i64} {
  func.func @_fused_head_kernel(%arg0: i32, %arg1: i32, %arg2: memref<1x10x18x32xbf16, #tpu.memory_space<vmem>>, %arg3: memref<3x96x160xbf16, #tpu.memory_space<vmem>>, %arg4: memref<1x160xf32, #tpu.memory_space<vmem>>, %arg5: memref<160x64xbf16, #tpu.memory_space<vmem>>, %arg6: memref<1x64xf32, #tpu.memory_space<vmem>>, %arg7: memref<1x64x128xf32, #tpu.memory_space<vmem>>, %arg8: memref<128x160xf32, #tpu.memory_space<vmem>>) attributes {dimension_semantics = [#tpu.dimension_semantics<parallel>, #tpu.dimension_semantics<parallel>], iteration_bounds = array<i64: 2, 2>, scalar_prefetch = 0 : i64, scratch_operands = 1 : i64, tpu.core_type = #tpu.core_type<tc>, window_params = [{transform_indices = @transform_0, window_bounds = array<i64: 1, 10, 18, 32>}, {pipeline_mode = #tpu.pipeline_mode<synchronous>, transform_indices = @transform_1, window_bounds = array<i64: 3, 96, 160>}, {pipeline_mode = #tpu.pipeline_mode<synchronous>, transform_indices = @transform_2, window_bounds = array<i64: 1, 160>}, {pipeline_mode = #tpu.pipeline_mode<synchronous>, transform_indices = @transform_3, window_bounds = array<i64: 160, 64>}, {pipeline_mode = #tpu.pipeline_mode<synchronous>, transform_indices = @transform_4, window_bounds = array<i64: 1, 64>}, {transform_indices = @transform_5, window_bounds = array<i64: 1, 64, 128>}]} {
    %c0 = arith.constant 0 : index
    %c0_0 = arith.constant 0 : index
    %0 = vector.load %arg4[%c0, %c0_0] : memref<1x160xf32, #tpu.memory_space<vmem>>, vector<1x160xf32>
    %1 = vector.shape_cast %0 : vector<1x160xf32> to vector<1x160xf32>
    %2 = vector.broadcast %1 : vector<1x160xf32> to vector<128x160xf32>
    %c0_1 = arith.constant 0 : index
    %c0_2 = arith.constant 0 : index
    %3 = vector.load %arg8[%c0_1, %c0_2] : memref<128x160xf32, #tpu.memory_space<vmem>>, vector<128x160xf32>
    tpu.vector_store %arg8[%c0_1, %c0_2], %2 {strides = array<i32>} : memref<128x160xf32, #tpu.memory_space<vmem>>, vector<128x160xf32>,
    %c0_3 = arith.constant 0 : index
    %c0_4 = arith.constant 0 : index
    %c0_5 = arith.constant 0 : index
    %c0_6 = arith.constant 0 : index
    %4 = vector.load %arg2[%c0_3, %c0_4, %c0_5, %c0_6] : memref<1x10x18x32xbf16, #tpu.memory_space<vmem>>, vector<1x8x18x32xbf16>
    %5 = vector.shape_cast %4 : vector<1x8x18x32xbf16> to vector<8x18x32xbf16>
    %6 = vector.extract_strided_slice %5 {offsets = [0, 0, 0], sizes = [8, 16, 32], strides = [1, 1, 1]} : vector<8x18x32xbf16> to vector<8x16x32xbf16>
    %7 = vector.shape_cast %6 : vector<8x16x32xbf16> to vector<128x32xbf16>
    %8 = vector.extract_strided_slice %5 {offsets = [0, 1, 0], sizes = [8, 16, 32], strides = [1, 1, 1]} : vector<8x18x32xbf16> to vector<8x16x32xbf16>
    %9 = vector.shape_cast %8 : vector<8x16x32xbf16> to vector<128x32xbf16>
    %10 = vector.extract_strided_slice %5 {offsets = [0, 2, 0], sizes = [8, 16, 32], strides = [1, 1, 1]} : vector<8x18x32xbf16> to vector<8x16x32xbf16>
    %11 = vector.shape_cast %10 : vector<8x16x32xbf16> to vector<128x32xbf16>
    %12 = tpu.concatenate %7, %9, %11 in 1 : vector<128x32xbf16>, vector<128x32xbf16>, vector<128x32xbf16> -> vector<128x96xbf16>
    %c0_7 = arith.constant 0 : index
    %c0_8 = arith.constant 0 : index
    %13 = vector.load %arg8[%c0_7, %c0_8] : memref<128x160xf32, #tpu.memory_space<vmem>>, vector<128x160xf32>
    %c0_9 = arith.constant 0 : index
    %c0_10 = arith.constant 0 : index
    %c0_11 = arith.constant 0 : index
    %14 = vector.load %arg3[%c0_9, %c0_10, %c0_11] : memref<3x96x160xbf16, #tpu.memory_space<vmem>>, vector<1x96x160xbf16>
    %15 = vector.shape_cast %14 : vector<1x96x160xbf16> to vector<96x160xbf16>
    %cst = arith.constant dense<0.000000e+00> : vector<128x160xf32>
    %16 = tpu.matmul %12, %15, %cst {dimension_numbers = #tpu.dot_dimension_numbers<[1], [0], [0], [1], [0, 0, 1, 1], [], []>} : vector<128x96xbf16>, vector<96x160xbf16>, vector<128x160xf32> -> vector<128x160xf32>
    %17 = arith.addf %13, %16 : vector<128x160xf32>
    %c0_12 = arith.constant 0 : index
    %c0_13 = arith.constant 0 : index
    %18 = vector.load %arg8[%c0_12, %c0_13] : memref<128x160xf32, #tpu.memory_space<vmem>>, vector<128x160xf32>
    tpu.vector_store %arg8[%c0_12, %c0_13], %17 {strides = array<i32>} : memref<128x160xf32, #tpu.memory_space<vmem>>, vector<128x160xf32>,
    %c0_14 = arith.constant 0 : index
    %c1 = arith.constant 1 : index
    %c0_15 = arith.constant 0 : index
    %c0_16 = arith.constant 0 : index
    %19 = vector.load %arg2[%c0_14, %c1, %c0_15, %c0_16] : memref<1x10x18x32xbf16, #tpu.memory_space<vmem>>, vector<1x8x18x32xbf16>
    %20 = vector.shape_cast %19 : vector<1x8x18x32xbf16> to vector<8x18x32xbf16>
    %21 = vector.extract_strided_slice %20 {offsets = [0, 0, 0], sizes = [8, 16, 32], strides = [1, 1, 1]} : vector<8x18x32xbf16> to vector<8x16x32xbf16>
    %22 = vector.shape_cast %21 : vector<8x16x32xbf16> to vector<128x32xbf16>
    %23 = vector.extract_strided_slice %20 {offsets = [0, 1, 0], sizes = [8, 16, 32], strides = [1, 1, 1]} : vector<8x18x32xbf16> to vector<8x16x32xbf16>
    %24 = vector.shape_cast %23 : vector<8x16x32xbf16> to vector<128x32xbf16>
    %25 = vector.extract_strided_slice %20 {offsets = [0, 2, 0], sizes = [8, 16, 32], strides = [1, 1, 1]} : vector<8x18x32xbf16> to vector<8x16x32xbf16>
    %26 = vector.shape_cast %25 : vector<8x16x32xbf16> to vector<128x32xbf16>
    %27 = tpu.concatenate %22, %24, %26 in 1 : vector<128x32xbf16>, vector<128x32xbf16>, vector<128x32xbf16> -> vector<128x96xbf16>
    %c0_17 = arith.constant 0 : index
    %c0_18 = arith.constant 0 : index
    %28 = vector.load %arg8[%c0_17, %c0_18] : memref<128x160xf32, #tpu.memory_space<vmem>>, vector<128x160xf32>
    %c1_19 = arith.constant 1 : index
    %c0_20 = arith.constant 0 : index
    %c0_21 = arith.constant 0 : index
    %29 = vector.load %arg3[%c1_19, %c0_20, %c0_21] : memref<3x96x160xbf16, #tpu.memory_space<vmem>>, vector<1x96x160xbf16>
    %30 = vector.shape_cast %29 : vector<1x96x160xbf16> to vector<96x160xbf16>
    %cst_22 = arith.constant dense<0.000000e+00> : vector<128x160xf32>
    %31 = tpu.matmul %27, %30, %cst_22 {dimension_numbers = #tpu.dot_dimension_numbers<[1], [0], [0], [1], [0, 0, 1, 1], [], []>} : vector<128x96xbf16>, vector<96x160xbf16>, vector<128x160xf32> -> vector<128x160xf32>
    %32 = arith.addf %28, %31 : vector<128x160xf32>
    %c0_23 = arith.constant 0 : index
    %c0_24 = arith.constant 0 : index
    %33 = vector.load %arg8[%c0_23, %c0_24] : memref<128x160xf32, #tpu.memory_space<vmem>>, vector<128x160xf32>
    tpu.vector_store %arg8[%c0_23, %c0_24], %32 {strides = array<i32>} : memref<128x160xf32, #tpu.memory_space<vmem>>, vector<128x160xf32>,
    %c0_25 = arith.constant 0 : index
    %c2 = arith.constant 2 : index
    %c0_26 = arith.constant 0 : index
    %c0_27 = arith.constant 0 : index
    %34 = vector.load %arg2[%c0_25, %c2, %c0_26, %c0_27] : memref<1x10x18x32xbf16, #tpu.memory_space<vmem>>, vector<1x8x18x32xbf16>
    %35 = vector.shape_cast %34 : vector<1x8x18x32xbf16> to vector<8x18x32xbf16>
    %36 = vector.extract_strided_slice %35 {offsets = [0, 0, 0], sizes = [8, 16, 32], strides = [1, 1, 1]} : vector<8x18x32xbf16> to vector<8x16x32xbf16>
    %37 = vector.shape_cast %36 : vector<8x16x32xbf16> to vector<128x32xbf16>
    %38 = vector.extract_strided_slice %35 {offsets = [0, 1, 0], sizes = [8, 16, 32], strides = [1, 1, 1]} : vector<8x18x32xbf16> to vector<8x16x32xbf16>
    %39 = vector.shape_cast %38 : vector<8x16x32xbf16> to vector<128x32xbf16>
    %40 = vector.extract_strided_slice %35 {offsets = [0, 2, 0], sizes = [8, 16, 32], strides = [1, 1, 1]} : vector<8x18x32xbf16> to vector<8x16x32xbf16>
    %41 = vector.shape_cast %40 : vector<8x16x32xbf16> to vector<128x32xbf16>
    %42 = tpu.concatenate %37, %39, %41 in 1 : vector<128x32xbf16>, vector<128x32xbf16>, vector<128x32xbf16> -> vector<128x96xbf16>
    %c0_28 = arith.constant 0 : index
    %c0_29 = arith.constant 0 : index
    %43 = vector.load %arg8[%c0_28, %c0_29] : memref<128x160xf32, #tpu.memory_space<vmem>>, vector<128x160xf32>
    %c2_30 = arith.constant 2 : index
    %c0_31 = arith.constant 0 : index
    %c0_32 = arith.constant 0 : index
    %44 = vector.load %arg3[%c2_30, %c0_31, %c0_32] : memref<3x96x160xbf16, #tpu.memory_space<vmem>>, vector<1x96x160xbf16>
    %45 = vector.shape_cast %44 : vector<1x96x160xbf16> to vector<96x160xbf16>
    %cst_33 = arith.constant dense<0.000000e+00> : vector<128x160xf32>
    %46 = tpu.matmul %42, %45, %cst_33 {dimension_numbers = #tpu.dot_dimension_numbers<[1], [0], [0], [1], [0, 0, 1, 1], [], []>} : vector<128x96xbf16>, vector<96x160xbf16>, vector<128x160xf32> -> vector<128x160xf32>
    %47 = arith.addf %43, %46 : vector<128x160xf32>
    %c0_34 = arith.constant 0 : index
    %c0_35 = arith.constant 0 : index
    %48 = vector.load %arg8[%c0_34, %c0_35] : memref<128x160xf32, #tpu.memory_space<vmem>>, vector<128x160xf32>
    tpu.vector_store %arg8[%c0_34, %c0_35], %47 {strides = array<i32>} : memref<128x160xf32, #tpu.memory_space<vmem>>, vector<128x160xf32>,
    %c0_36 = arith.constant 0 : index
    %c0_37 = arith.constant 0 : index
    %49 = vector.load %arg8[%c0_36, %c0_37] : memref<128x160xf32, #tpu.memory_space<vmem>>, vector<128x160xf32>
    %cst_38 = arith.constant 0.000000e+00 : f32
    %50 = vector.broadcast %cst_38 : f32 to vector<128x160xf32>
    %51 = arith.maximumf %49, %50 : vector<128x160xf32>
    %52 = arith.truncf %51 : vector<128x160xf32> to vector<128x160xbf16>
    %c0_39 = arith.constant 0 : index
    %c0_40 = arith.constant 0 : index
    %53 = vector.load %arg5[%c0_39, %c0_40] : memref<160x64xbf16, #tpu.memory_space<vmem>>, vector<160x64xbf16>
    %cst_41 = arith.constant dense<0.000000e+00> : vector<128x64xf32>
    %54 = tpu.matmul %52, %53, %cst_41 {dimension_numbers = #tpu.dot_dimension_numbers<[1], [0], [0], [1], [0, 0, 1, 1], [], []>} : vector<128x160xbf16>, vector<160x64xbf16>, vector<128x64xf32> -> vector<128x64xf32>
    %c0_42 = arith.constant 0 : index
    %c0_43 = arith.constant 0 : index
    %55 = vector.load %arg6[%c0_42, %c0_43] : memref<1x64xf32, #tpu.memory_space<vmem>>, vector<1x64xf32>
    %56 = vector.broadcast %55 : vector<1x64xf32> to vector<128x64xf32>
    %57 = arith.addf %54, %56 : vector<128x64xf32>
    %58 = tpu.iota {dimensions = array<i32: 1>} : vector<128x64xi32>
    %59 = arith.negf %57 : vector<128x64xf32>
    %60 = math.exp %59 : vector<128x64xf32>
    %cst_44 = arith.constant 1.000000e+00 : f32
    %61 = vector.broadcast %cst_44 : f32 to vector<128x64xf32>
    %62 = arith.addf %61, %60 : vector<128x64xf32>
    %63 = arith.divf %61, %62 : vector<128x64xf32>
    %cst_45 = arith.constant 9.99999974E-5 : f32
    %cst_46 = arith.constant 0.999899983 : f32
    %64 = vector.broadcast %cst_45 : f32 to vector<128x64xf32>
    %65 = arith.maximumf %64, %63 : vector<128x64xf32>
    %66 = vector.broadcast %cst_46 : f32 to vector<128x64xf32>
    %67 = arith.minimumf %66, %65 : vector<128x64xf32>
    %c3_i32 = arith.constant 3 : i32
    %68 = vector.broadcast %c3_i32 : i32 to vector<128x64xi32>
    %69 = arith.cmpi slt, %58, %68 : vector<128x64xi32>
    %70 = arith.select %69, %67, %57 : vector<128x64xi1>, vector<128x64xf32>
    %71 = vector.extract_strided_slice %70 {offsets = [0, 0], sizes = [64, 64], strides = [1, 1]} : vector<128x64xf32> to vector<64x64xf32>
    %72 = vector.extract_strided_slice %70 {offsets = [64, 0], sizes = [64, 64], strides = [1, 1]} : vector<128x64xf32> to vector<64x64xf32>
    %73 = tpu.concatenate %71, %72 in 1 : vector<64x64xf32>, vector<64x64xf32> -> vector<64x128xf32>
    %c0_47 = arith.constant 0 : index
    %c0_48 = arith.constant 0 : index
    %c0_49 = arith.constant 0 : index
    %74 = vector.load %arg7[%c0_47, %c0_48, %c0_49] : memref<1x64x128xf32, #tpu.memory_space<vmem>>, vector<1x64x128xf32>
    %75 = vector.shape_cast %74 : vector<1x64x128xf32> to vector<64x128xf32>
    %76 = vector.shape_cast %73 : vector<64x128xf32> to vector<1x64x128xf32>
    tpu.vector_store %arg7[%c0_47, %c0_48, %c0_49], %76 {strides = array<i32>} : memref<1x64x128xf32, #tpu.memory_space<vmem>>, vector<1x64x128xf32>,
    return
  }
  func.func @transform_0(%arg0: i32, %arg1: i32) -> (i32, i32, i32, i32) {
    %c2_i32 = arith.constant 2 : i32
    %0 = arith.muli %arg0, %c2_i32 : i32
    %1 = arith.addi %0, %arg1 : i32
    %c0_i32 = arith.constant 0 : i32
    %c0_i32_0 = arith.constant 0 : i32
    %c0_i32_1 = arith.constant 0 : i32
    %c0_i32_2 = arith.constant 0 : i32
    return %1, %c0_i32, %c0_i32_0, %c0_i32_1 : i32, i32, i32, i32
  }
  func.func @transform_1(%arg0: i32, %arg1: i32) -> (i32, i32, i32) {
    %c0_i32 = arith.constant 0 : i32
    %c0_i32_0 = arith.constant 0 : i32
    %c0_i32_1 = arith.constant 0 : i32
    %c0_i32_2 = arith.constant 0 : i32
    return %c0_i32, %c0_i32_0, %c0_i32_1 : i32, i32, i32
  }
  func.func @transform_2(%arg0: i32, %arg1: i32) -> (i32, i32) {
    %c0_i32 = arith.constant 0 : i32
    %c0_i32_0 = arith.constant 0 : i32
    %c0_i32_1 = arith.constant 0 : i32
    return %c0_i32, %c0_i32_0 : i32, i32
  }
  func.func @transform_3(%arg0: i32, %arg1: i32) -> (i32, i32) {
    %c0_i32 = arith.constant 0 : i32
    %c0_i32_0 = arith.constant 0 : i32
    %c0_i32_1 = arith.constant 0 : i32
    return %c0_i32, %c0_i32_0 : i32, i32
  }
  func.func @transform_4(%arg0: i32, %arg1: i32) -> (i32, i32) {
    %c0_i32 = arith.constant 0 : i32
    %c0_i32_0 = arith.constant 0 : i32
    %c0_i32_1 = arith.constant 0 : i32
    return %c0_i32, %c0_i32_0 : i32, i32
  }
  func.func @transform_5(%arg0: i32, %arg1: i32) -> (i32, i32, i32) {
    %c2_i32 = arith.constant 2 : i32
    %0 = arith.muli %arg0, %c2_i32 : i32
    %1 = arith.addi %0, %arg1 : i32
    %c0_i32 = arith.constant 0 : i32
    %c0_i32_0 = arith.constant 0 : i32
    %c0_i32_1 = arith.constant 0 : i32
    return %1, %c0_i32, %c0_i32_0 : i32, i32, i32
  }
}

</mosaic_0001>

<bundles_post_ra>
// kernel: monoflex_head_forward.1
= control target key start
LH: loop header
LB: loop body
LE: loop exit
PB: predicated region body
PF: predicated region fallthrough
CT: control target
= control target key end

     0   :  { %s3661_s18 = smov 0   ;;  %s3663_s19 = smov 0   ;;  %s4860_s0 = inlined_call_operand.vmem [shape: bf16[4,10,18,32], index: 0, kind: input, shape index: {}]   ;;  %s4861_s1 = inlined_call_operand.vmem [shape: bf16[3,96,160], index: 1, kind: input, shape index: {}]   ;;  %s4862_s2 = inlined_call_operand.vmem [shape: f32[1,160], index: 2, kind: input, shape index: {}]   ;;  %s4863_s3 = inlined_call_operand.vmem [shape: bf16[160,64], index: 3, kind: input, shape index: {}]   ;;  %s4864_s4 = inlined_call_operand.vmem [shape: f32[1,64], index: 4, kind: input, shape index: {}]   ;;  %s4865_s5 = inlined_call_operand.vmem [shape: f32[4,64,128], index: 5, kind: output, shape index: {}]  }
   0x1   :  { %s3665_s20 = smov 0   ;;  %s3667_s21 = smov 0  }
   0x2   :  { %s3669_s22 = smov 0  }
   0x3 LB: > { %s24_s23 = sadd.s32 1, %s3618_s20  ;;  %s27_s24 = sadd.s32 1, %s3622_s21  ;;  %s3626_s22 = sphi %s3669_s22, %s15_s22   ;;  %s3622_s21 = sphi %s3667_s21, %s4873_s21   ;;  %s3618_s20 = sphi %s3665_s20, %s4872_s20   ;;  %s3614_s19 = sphi %s3663_s19, %s4871_s19   ;;  %s3610_s18 = sphi %s3661_s18, %s4870_s18  }
   0x4   : > { %p25_p0 = scmp.ge.s32.totalorder %s24_s23, 2  ;;  %p3094_p1 = scmp.ge.s32.totalorder %s3626_s22, 1 }
   0x5   : > { %p211_p2 = scmp.lt.s32.totalorder %s3626_s22, 5 }
   0x6   : > { %s4875_s23 = smov (%p25_p0, %s24_s23), 0  ;;  %s4877_s24 = smov (!%p25_p0, %s27_s24), %s3622_s21 }
   0x7   : > { %p212_p3 = pnand %p3094_p1, %p211_p2  ;;  %p29_p4 = scmp.ge.s32.totalorder %s4877_s24, 2 }
   0x8   : > { %s3095_s25 = sshll.u32 (!%p212_p3), %s3614_s19, 1  ;;  %s3628_s6 = smov (!%p212_p3), 32  }
   0x9   : > { %s4879_s24 = smov (%p29_p4, %s4877_s24), 0  ;;  %215 = sbr.rel (%p212_p3) target bundleno = 856 (0x358), region = 40 }
   0xa   : > { %s244_s26 = sadd.s32 (!%p212_p3), %s3610_s18, %s3095_s25  ;;  %s3629_s7 = smov (!%p212_p3), 64  }
   0xb   : > { %p245_p5 = scmp.lt.s32.totalorder (!%p212_p3), %s244_s26, 3 }
   0xe   : > { %s4881_s26 = smov (!%p245_p5, %s244_s26), 3  ;;  %vm331_vm0 = vsmask.f32 3328  ;;  %vm332_vm1 = vsmask.f32 7440  ;;  %vm550_vm2 = vcmask 1042432  }
   0xf   : > { %s3366_s27 = smul.u32 120, %s4881_s26  ;;  %vm551_vm3 = vcmask 1046532   ;;  %vm3713_vm5 = vmor %vm331_vm0, %vm332_vm1  ;;  %vm275_vm6 = vcmask 261120   ;;  %vm737_vm7 = vcmask 523264   ;;  %vm858_vm8 = vcmask 785408  }
  0x10   : > { %vm3707_vm4 = vmor %vm550_vm2, %vm551_vm3  ;;  %v3465_v24 = vld [vmem:[%s4861_s1 + $0xe0] ss:$8 sps:$4 sm:$0xff]  }
  0x11   : > { %s3697_s30 = scalar_lea.vmem %s4860_s0, %s3366_s27 }
  0x12   : > { %v307_v0 = vld [vmem:[%s3697_s30] sm:$0xf]  ;;  %v308_v1 = vld [vmem:[%s3697_s30 + $0x4] sm:$0xf]  ;;  %v309_v2 = vld [vmem:[%s3697_s30 + $0x8] sm:$0x1] }
  0x13   : > { %v335_v3 = vshrl.u32 %v307_v0, 16  ;;  %v338_v4 = vshll.u32 %v307_v0, 16  ;;  %v344_v5 = vshll.u32 %v308_v1, 16  ;;  %v348_v6 = vshrl.u32 %v308_v1, 16  ;;  %v310_v7 = vld [vmem:[%s3697_s30 + $0xc] sm:$0xf] }
  0x14   : > { %v354_v8 = vshll.u32 %v309_v2, 16  ;;  %v311_v9 = vld [vmem:[%s3697_s30 + $0x10] sm:$0xf]  ;;  %v312_v10 = vld [vmem:[%s3697_s30 + $0x14] sm:$0x1]  ;;  %v359_v11 = vshrl.u32 %v310_v7, 16 }
  0x15   : > { %v337_v12 = vrot.slane %v335_v3, 4  ;;  %v340_v13 = vrot.slane %v338_v4, 5  ;;  %v346_v14 = vrot.slane %v344_v5, 5  ;;  %v350_v15 = vrot.slane %v348_v6, 4  ;;  %v313_v38 = vld [vmem:[%s3697_s30 + $0x18] sm:$0xf] }
  0x16   : > { %v356_v16 = vrot.slane %v354_v8, 5  ;;  %v361_v17 = vrot.slane %v359_v11, 4  ;;  %v362_v18 = vshll.u32 %v310_v7, 16  ;;  %v368_v19 = vshll.u32 %v311_v9, 16  ;;  %v314_v47 = vld [vmem:[%s3697_s30 + $0x1c] sm:$0xf] }
  0x17   : > { %v341_v20 = vor.u32 %v340_v13, %v337_v12  ;;  %v351_v21 = vor.u32 %v350_v15, %v346_v14  ;;  %v372_v22 = vshrl.u32 %v311_v9, 16  ;;  %v378_v23 = vshll.u32 %v312_v10, 16  ;;  %v315_v51 = vld [vmem:[%s3697_s30 + $0x20] sm:$0x1]  ;;  %v318_v12 = vld [vmem:[%s3697_s30 + $0x2c] sm:$0x1] }
  0x18   : > { %v364_v26 = vrot.slane %v362_v18, 5  ;;  %v370_v27 = vrot.slane %v368_v19, 5  ;;  %v3100_v28 = vrot.slane %v307_v0, 9  ;;  %v555_v29 = vrot.slane %v308_v1, 5  ;;  %v316_v1 = vld [vmem:[%s3697_s30 + $0x24] sm:$0xf] }
  0x19   : > { %v342_v30 = vrot.slane %v341_v20, 4  ;;  %v352_v31 = vrot.slane %v351_v21, 4  ;;  %v374_v32 = vrot.slane %v372_v22, 4  ;;  %v380_v33 = vrot.slane %v378_v23, 5 }
  0x1a   : > { %v365_v34 = vor.u32 %v364_v26, %v361_v17  ;;  %v556_v35 = vsel %vm3707_vm4, %v3100_v28, %v555_v29  ;;  %v557_v36 = vrot.slane %v555_v29, 4  ;;  %v558_v37 = vrot.slane %v309_v2, 5  ;;  %v317_v2 = vld [vmem:[%s3697_s30 + $0x28] sm:$0xf] }
  0x1b   : > { %v347_v39 = vsel %vm3713_vm5, %v342_v30, %v346_v14  ;;  %v357_v40 = vsel %vm3713_vm5, %v352_v31, %v356_v16  ;;  %v375_v41 = vor.u32 %v374_v32, %v370_v27  ;;  %v3101_v42 = vrot.slane %v310_v7, 9  ;;  %v319_v30 = vld [vmem:[%s3697_s30 + $0x30] sm:$0xf] }
  0x1c   : > { %v3116_v43 = vcombine.low %v347_v39, %v357_v40  ;;  %v366_v44 = vrot.slane %v365_v34, 4  ;;  %v559_v45 = vsel %vm3707_vm4, %v557_v36, %v558_v37  ;;  %v562_v46 = vrot.slane %v311_v9, 5 }
  0x1d   : > { %v376_v48 = vrot.slane %v375_v41, 4  ;;  %v3124_v49 = vcombine.low %v556_v35, %v559_v45  ;;  %v565_v50 = vrot.slane %v312_v10, 5  ;;  %v383_v52 = vshrl.u32 %v313_v38, 16  ;;  %v320_v35 = vld [vmem:[%s3697_s30 + $0x34] sm:$0xf] }
  0x1e   : > { %657 = vrot.lane.b32.xlu0 %v3116_v43, %s3628_s6  ;;  %v371_v53 = vsel %vm3713_vm5, %v366_v44, %v370_v27  ;;  %v563_v54 = vsel %vm3707_vm4, %v3101_v42, %v562_v46  ;;  %v564_v55 = vrot.slane %v562_v46, 4  ;;  %v386_v56 = vshll.u32 %v313_v38, 16  ;;  %v321_v42 = vld [vmem:[%s3697_s30 + $0x38] sm:$0x1] }
  0x1f   : > { %v381_v57 = vsel %vm3713_vm5, %v376_v48, %v380_v33  ;;  %v385_v58 = vrot.slane %v383_v52, 4  ;;  %v392_v59 = vshll.u32 %v314_v47, 16  ;;  %v396_v60 = vshrl.u32 %v314_v47, 16 }
  0x20   : > { %v3117_v61 = vcombine.low %v371_v53, %v381_v57  ;;  %v566_v62 = vsel %vm3707_vm4, %v564_v55, %v565_v50  ;;  %v388_v63 = vrot.slane %v386_v56, 5  ;;  %v402_v0 = vshll.u32 %v315_v51, 16  ;;  %v322_v57 = vld [vmem:[%s3697_s30 + $0x3c] sm:$0xf] }
  0x21   : > { %v3125_v3 = vcombine.low %v563_v54, %v566_v62  ;;  %v394_v4 = vrot.slane %v392_v59, 5  ;;  %v398_v5 = vrot.slane %v396_v60, 4  ;;  %v3102_v6 = vrot.slane %v313_v38, 9  ;;  %v323_v62 = vld [vmem:[%s3697_s30 + $0x40] sm:$0xf] }
  0x22   : > { %659 = vrot.lane.b32.xlu1 %v3117_v61, %s3628_s6  ;;  %697 = vrot.lane.b32.xlu0 %v3124_v49, %s3629_s7  ;;  %v389_v7 = vor.u32 %v388_v63, %v385_v58  ;;  %v404_v8 = vrot.slane %v402_v0, 5  ;;  %v569_v9 = vrot.slane %v314_v47, 5  ;;  %v572_v10 = vrot.slane %v315_v51, 5 }
  0x23   : > { %v399_v11 = vor.u32 %v398_v5, %v394_v4  ;;  %v407_v13 = vshrl.u32 %v316_v1, 16  ;;  %v410_v14 = vshll.u32 %v316_v1, 16  ;;  %v416_v15 = vshll.u32 %v317_v2, 16  ;;  %v324_v5 = vld [vmem:[%s3697_s30 + $0x44] sm:$0x1] }
  0x24   : > { %v390_v16 = vrot.slane %v389_v7, 4  ;;  %v570_v17 = vsel %vm3707_vm4, %v3102_v6, %v569_v9  ;;  %v571_v18 = vrot.slane %v569_v9, 4  ;;  %v420_v19 = vshrl.u32 %v317_v2, 16 }
  0x25   : > { %v400_v20 = vrot.slane %v399_v11, 4  ;;  %v409_v21 = vrot.slane %v407_v13, 4  ;;  %v412_v22 = vrot.slane %v410_v14, 5  ;;  %v418_v23 = vrot.slane %v416_v15, 5 }
  0x26   : > { %699 = vrot.lane.b32.xlu1 %v3125_v3, %s3629_s7  ;;  %v395_v26 = vsel %vm3713_vm5, %v390_v16, %v394_v4  ;;  %v573_v27 = vsel %vm3707_vm4, %v571_v18, %v572_v10  ;;  %v422_v28 = vrot.slane %v420_v19, 4  ;;  %v426_v29 = vshll.u32 %v318_v12, 16 }
  0x27   : > { %v405_v31 = vsel %vm3713_vm5, %v400_v20, %v404_v8  ;;  %v3126_v32 = vcombine.low %v570_v17, %v573_v27  ;;  %v413_v33 = vor.u32 %v412_v22, %v409_v21  ;;  %v3103_v34 = vrot.slane %v316_v1, 9  ;;  %v325_v20 = vld [vmem:[%s3697_s30 + $0x48] sm:$0xf]  ;;  %v326_v27 = vld [vmem:[%s3697_s30 + $0x4c] sm:$0xf] }
  0x28   : > { %v3118_v36 = vcombine.low %v395_v26, %v405_v31  ;;  %v423_v37 = vor.u32 %v422_v28, %v418_v23  ;;  %v428_v38 = vrot.slane %v426_v29, 5  ;;  %v576_v39 = vrot.slane %v317_v2, 5 }
  0x29   : > { %v414_v40 = vrot.slane %v413_v33, 4  ;;  %v579_v41 = vrot.slane %v318_v12, 5  ;;  %v431_v43 = vshrl.u32 %v319_v30, 16  ;;  %v434_v44 = vshll.u32 %v319_v30, 16 }
  0x2a   : > { %661 = vrot.lane.b32.xlu0 %v3118_v36, %s3628_s6  ;;  %701 = vrot.lane.b32.xlu1 %v3126_v32, %s3629_s7  ;;  %v424_v45 = vrot.slane %v423_v37, 4  ;;  %v577_v46 = vsel %vm3707_vm4, %v3103_v34, %v576_v39  ;;  %v578_v47 = vrot.slane %v576_v39, 4  ;;  %v440_v48 = vshll.u32 %v320_v35, 16  ;;  %v327_v34 = vld [vmem:[%s3697_s30 + $0x50] sm:$0x1] }
  0x2b   : > { %v419_v49 = vsel %vm3713_vm5, %v414_v40, %v418_v23  ;;  %v433_v50 = vrot.slane %v431_v43, 4  ;;  %v436_v51 = vrot.slane %v434_v44, 5  ;;  %v444_v52 = vshrl.u32 %v320_v35, 16 }
  0x2c   : > { %v429_v53 = vsel %vm3713_vm5, %v424_v45, %v428_v38  ;;  %v580_v54 = vsel %vm3707_vm4, %v578_v47, %v579_v41  ;;  %v442_v55 = vrot.slane %v440_v48, 5  ;;  %v450_v56 = vshll.u32 %v321_v42, 16 }
  0x2d   : > { %v3119_v58 = vcombine.low %v419_v49, %v429_v53  ;;  %v3127_v59 = vcombine.low %v577_v46, %v580_v54  ;;  %v437_v60 = vor.u32 %v436_v51, %v433_v50  ;;  %v446_v61 = vrot.slane %v444_v52, 4  ;;  %v3152_v49 = vld [vmem:[%s3697_s30 + $0xc] sm:$0xf]  ;;  %v3153_v54 = vld [vmem:[%s3697_s30 + $0x10] sm:$0xf] }
  0x2e   : > { %v452_v63 = vrot.slane %v450_v56, 5  ;;  %v3104_v0 = vrot.slane %v319_v30, 9  ;;  %v583_v1 = vrot.slane %v320_v35, 5  ;;  %v586_v2 = vrot.slane %v321_v42, 5 }
  0x2f   : > { %663 = vrot.lane.b32.xlu0 %v3119_v58, %s3628_s6  ;;  %703 = vrot.lane.b32.xlu1 %v3127_v59, %s3629_s7  ;;  %v438_v3 = vrot.slane %v437_v60, 4  ;;  %v447_v4 = vor.u32 %v446_v61, %v442_v55  ;;  %v455_v6 = vshrl.u32 %v322_v57, 16  ;;  %v458_v7 = vshll.u32 %v322_v57, 16  ;;  %v3154_v61 = vld [vmem:[%s3697_s30 + $0x14] sm:$0x1] }
  0x30   : > { %v584_v8 = vsel %vm3707_vm4, %v3104_v0, %v583_v1  ;;  %v585_v9 = vrot.slane %v583_v1, 4  ;;  %v464_v10 = vshll.u32 %v323_v62, 16  ;;  %v468_v11 = vshrl.u32 %v323_v62, 16 }
  0x31   : > { %v443_v12 = vsel %vm3713_vm5, %v438_v3, %v442_v55  ;;  %v448_v13 = vrot.slane %v447_v4, 4  ;;  %v457_v14 = vrot.slane %v455_v6, 4  ;;  %v460_v15 = vrot.slane %v458_v7, 5 }
  0x32   : > { %v587_v16 = vsel %vm3707_vm4, %v585_v9, %v586_v2  ;;  %v466_v17 = vrot.slane %v464_v10, 5  ;;  %v470_v18 = vrot.slane %v468_v11, 4  ;;  %v474_v19 = vshll.u32 %v324_v5, 16 }
  0x33   : > { %v453_v21 = vsel %vm3713_vm5, %v448_v13, %v452_v63  ;;  %v3128_v22 = vcombine.low %v584_v8, %v587_v16  ;;  %v461_v23 = vor.u32 %v460_v15, %v457_v14  ;;  %v3105_v26 = vrot.slane %v322_v57, 9 }
  0x34   : > { %v3120_v28 = vcombine.low %v443_v12, %v453_v21  ;;  %v471_v29 = vor.u32 %v470_v18, %v466_v17  ;;  %v476_v30 = vrot.slane %v474_v19, 5  ;;  %v590_v31 = vrot.slane %v323_v62, 5  ;;  %v328_v12 = vld [vmem:[%s3697_s30 + $0x54] sm:$0xf] }
  0x35   : > { %705 = vrot.lane.b32.xlu1 %v3128_v22, %s3629_s7  ;;  %v462_v32 = vrot.slane %v461_v23, 4  ;;  %v593_v33 = vrot.slane %v324_v5, 5  ;;  %v479_v35 = vshrl.u32 %v325_v20, 16  ;;  %v482_v36 = vshll.u32 %v325_v20, 16  ;;  %v330_v22 = vld [vmem:[%s3697_s30 + $0x5c] sm:$0x1] }
  0x36   : > { %665 = vrot.lane.b32.xlu0 %v3120_v28, %s3628_s6  ;;  %v472_v37 = vrot.slane %v471_v29, 4  ;;  %v591_v38 = vsel %vm3707_vm4, %v3105_v26, %v590_v31  ;;  %v592_v39 = vrot.slane %v590_v31, 4  ;;  %v488_v40 = vshll.u32 %v326_v27, 16  ;;  %v3410_v23 = vld [vmem:[%s4861_s1 + $0x54] ss:$8 sps:$4 sm:$0xff]  }
  0x37   : > { %v467_v41 = vsel %vm3713_vm5, %v462_v32, %v466_v17  ;;  %v481_v42 = vrot.slane %v479_v35, 4  ;;  %v484_v43 = vrot.slane %v482_v36, 5  ;;  %v492_v44 = vshrl.u32 %v326_v27, 16  ;;  %v329_v17 = vld [vmem:[%s3697_s30 + $0x58] sm:$0xf]  ;;  %879 = vmatprep.subr.bf16.mxu0 %v3410_v23 }
  0x38   : > { %v477_v45 = vsel %vm3713_vm5, %v472_v37, %v476_v30  ;;  %v594_v46 = vsel %vm3707_vm4, %v592_v39, %v593_v33  ;;  %v490_v47 = vrot.slane %v488_v40, 5  ;;  %v498_v48 = vshll.u32 %v327_v34, 16  ;;  %v3412_v30 = vld [vmem:[%s4861_s1 + $0x50] ss:$8 sps:$4 sm:$0xff]   ;;  %v3413_v35 = vld [vmem:[%s4861_s1 + $0x44] ss:$8 sps:$4 sm:$0xff]  }
  0x39   : > { %v3121_v50 = vcombine.low %v467_v41, %v477_v45  ;;  %v3129_v51 = vcombine.low %v591_v38, %v594_v46  ;;  %v485_v52 = vor.u32 %v484_v43, %v481_v42  ;;  %v494_v53 = vrot.slane %v492_v44, 4  ;;  %880 = vmatpush1.bf16.msra.mxu0 %v3412_v30  ;;  %v3155_v44 = vld [vmem:[%s3697_s30 + $0x18] sm:$0xf]  ;;  %v3415_v45 = vld [vmem:[%s4861_s1 + $0x40] ss:$8 sps:$4 sm:$0xff]  }
  0x3a   : > { %v500_v55 = vrot.slane %v498_v48, 5  ;;  %v3106_v56 = vrot.slane %v325_v20, 9  ;;  %v597_v57 = vrot.slane %v326_v27, 5  ;;  %v600_v58 = vrot.slane %v327_v34, 5  ;;  %881 = vmatprep.subr.bf16.mxu0 %v3413_v35  ;;  %v3422_v23 = vld [vmem:[%s4861_s1 + $0x14] ss:$8 sps:$4 sm:$0xff]  }
  0x3b   : > { %667 = vrot.lane.b32.xlu0 %v3121_v50, %s3628_s6  ;;  %707 = vrot.lane.b32.xlu1 %v3129_v51, %s3629_s7  ;;  %v486_v59 = vrot.slane %v485_v52, 4  ;;  %v495_v60 = vor.u32 %v494_v53, %v490_v47  ;;  %v1078_v62 = vshrl.u32 %v3152_v49, 16  ;;  %v1081_v63 = vshll.u32 %v3152_v49, 16  ;;  %v3156_v50 = vld [vmem:[%s3697_s30 + $0x1c] sm:$0xf] }
  0x3c   : > { %v598_v0 = vsel %vm3707_vm4, %v3106_v56, %v597_v57  ;;  %v599_v1 = vrot.slane %v597_v57, 4  ;;  %v1087_v2 = vshll.u32 %v3153_v54, 16  ;;  %v1091_v3 = vshrl.u32 %v3153_v54, 16  ;;  %v3416_v51 = vld [vmem:[%s4861_s1 + $0x34] ss:$8 sps:$4 sm:$0xff]  }
  0x3d   : > { %v491_v4 = vsel %vm3713_vm5, %v486_v59, %v490_v47  ;;  %v496_v5 = vrot.slane %v495_v60, 4  ;;  %v1080_v6 = vrot.slane %v1078_v62, 4  ;;  %v1083_v7 = vrot.slane %v1081_v63, 5  ;;  %882 = vmatpush1.bf16.msra.mxu0 %v3415_v45  ;;  %v3433_v30 = vld [vmem:[%s4861_s1 + $0xb4] ss:$8 sps:$4 sm:$0xff]  }
  0x3e   : > { %v601_v8 = vsel %vm3707_vm4, %v599_v1, %v600_v58  ;;  %v1089_v9 = vrot.slane %v1087_v2, 5  ;;  %v1093_v10 = vrot.slane %v1091_v3, 4  ;;  %v1097_v11 = vshll.u32 %v3154_v61, 16  ;;  %v3157_v58 = vld [vmem:[%s3697_s30 + $0x20] sm:$0x1]  ;;  %883 = vmatprep.subr.bf16.mxu0 %v3416_v51  ;;  %1618 = vmatprep.subr.bf16.mxu1 %v3433_v30 }
  0x3f   : > { %v501_v13 = vsel %vm3713_vm5, %v496_v5, %v500_v55  ;;  %v3130_v14 = vcombine.low %v598_v0, %v601_v8  ;;  %v1084_v15 = vor.u32 %v1083_v7, %v1080_v6  ;;  %v3176_v16 = vrot.slane %v3152_v49, 9  ;;  %v3418_v1 = vld [vmem:[%s4861_s1 + $0x30] ss:$8 sps:$4 sm:$0xff]   ;;  %v3419_v6 = vld [vmem:[%s4861_s1 + $0x24] ss:$8 sps:$4 sm:$0xff]  }
  0x40   : > { %v3122_v18 = vcombine.low %v491_v4, %v501_v13  ;;  %v1094_v19 = vor.u32 %v1093_v10, %v1089_v9  ;;  %v1099_v20 = vrot.slane %v1097_v11, 5  ;;  %v1295_v21 = vrot.slane %v3153_v54, 5  ;;  %v3849_v11 = vld [vmem:[%s3697_s30 + $0x18] sm:$0xf]  ;;  %v3873_v35 = vld [vmem:[%s3697_s30 + $0x24] sm:$0xf] }
  0x41   : > { %709 = vrot.lane.b32.xlu1 %v3130_v14, %s3629_s7  ;;  %v1085_v26 = vrot.slane %v1084_v15, 4  ;;  %v1298_v27 = vrot.slane %v3154_v61, 5  ;;  %v503_v28 = vshrl.u32 %v328_v12, 16  ;;  %v506_v29 = vshll.u32 %v328_v12, 16  ;;  %884 = vmatpush1.bf16.msra.mxu0 %v3418_v1  ;;  %v3245_v30 = vld [vmem:[%s3697_s30 + $0x2c] sm:$0x1] }
  0x42   : > { %669 = vrot.lane.b32.xlu0 %v3122_v18, %s3628_s6  ;;  %v1095_v31 = vrot.slane %v1094_v19, 4  ;;  %v1296_v32 = vsel %vm3707_vm4, %v3176_v16, %v1295_v21  ;;  %v1297_v33 = vrot.slane %v1295_v21, 4  ;;  %v512_v34 = vshll.u32 %v329_v17, 16  ;;  %v3241_v16 = vld [vmem:[%s3697_s30 + $0x1c] sm:$0xf]  ;;  %885 = vmatprep.subr.bf16.mxu0 %v3419_v6 }
  0x43   : > { %v1090_v36 = vsel %vm3713_vm5, %v1085_v26, %v1089_v9  ;;  %v505_v37 = vrot.slane %v503_v28, 4  ;;  %v508_v38 = vrot.slane %v506_v29, 5  ;;  %v516_v39 = vshrl.u32 %v329_v17, 16 }
  0x44   : > { %v1100_v40 = vsel %vm3713_vm5, %v1095_v31, %v1099_v20  ;;  %v1299_v41 = vsel %vm3707_vm4, %v1297_v33, %v1298_v27  ;;  %v514_v42 = vrot.slane %v512_v34, 5  ;;  %v522_v43 = vshll.u32 %v330_v22, 16 }
  0x45   : > { %v3192_v46 = vcombine.low %v1090_v36, %v1100_v40  ;;  %v3200_v47 = vcombine.low %v1296_v32, %v1299_v41  ;;  %v509_v48 = vor.u32 %v508_v38, %v505_v37  ;;  %v518_v49 = vrot.slane %v516_v39, 4  ;;  %v3435_v36 = vld [vmem:[%s4861_s1 + $0xb0] ss:$8 sps:$4 sm:$0xff]   ;;  %v3881_v41 = vld [vmem:[%s3697_s30 + $0x28] sm:$0xf] }
  0x46   : > { %v524_v52 = vrot.slane %v522_v43, 5  ;;  %v3107_v53 = vrot.slane %v328_v12, 9  ;;  %v604_v54 = vrot.slane %v329_v17, 5  ;;  %v607_v55 = vrot.slane %v330_v22, 5  ;;  %v3855_v17 = vld [vmem:[%s3697_s30 + $0x20] sm:$0x1]  ;;  %1619 = vmatpush1.bf16.msra.mxu1 %v3435_v36 }
  0x47   : > { %1397 = vrot.lane.b32.xlu0 %v3192_v46, %s3628_s6  ;;  %1437 = vrot.lane.b32.xlu1 %v3200_v47, %s3629_s7  ;;  %v510_v56 = vrot.slane %v509_v48, 4  ;;  %v519_v57 = vor.u32 %v518_v49, %v514_v42  ;;  %v1102_v59 = vshrl.u32 %v3155_v44, 16  ;;  %v1105_v60 = vshll.u32 %v3155_v44, 16  ;;  %v3421_v22 = vld [vmem:[%s4861_s1 + $0x20] ss:$8 sps:$4 sm:$0xff]  }
  0x48   : > { %v605_v61 = vsel %vm3707_vm4, %v3107_v53, %v604_v54  ;;  %v606_v62 = vrot.slane %v604_v54, 4  ;;  %v1111_v63 = vshll.u32 %v3156_v50, 16  ;;  %v1115_v0 = vshrl.u32 %v3156_v50, 16  ;;  %886 = vmatpush1.bf16.msra.mxu0 %v3421_v22  ;;  %v3424_v46 = vld [vmem:[%s4861_s1 + $0x10] ss:$8 sps:$4 sm:$0xff]  }
  0x49   : > { %v515_v2 = vsel %vm3713_vm5, %v510_v56, %v514_v42  ;;  %v520_v3 = vrot.slane %v519_v57, 4  ;;  %v1104_v4 = vrot.slane %v1102_v59, 4  ;;  %v1107_v5 = vrot.slane %v1105_v60, 5  ;;  %v3426_v47 = vld [vmem:[%s4861_s1 + $0x4] ss:$8 sps:$4 sm:$0xff]   ;;  %887 = vmatprep.subr.bf16.mxu0 %v3422_v23 }
  0x4a   : > { %v608_v7 = vsel %vm3707_vm4, %v606_v62, %v607_v55  ;;  %v1113_v8 = vrot.slane %v1111_v63, 5  ;;  %v1117_v9 = vrot.slane %v1115_v0, 4  ;;  %v1121_v10 = vshll.u32 %v3157_v58, 16  ;;  %v3439_v53 = vld [vmem:[%s4861_s1 + $0xa0] ss:$8 sps:$4 sm:$0xff]  }
  0x4b   : > { %v525_v12 = vsel %vm3713_vm5, %v520_v3, %v524_v52  ;;  %v3131_v13 = vcombine.low %v605_v61, %v608_v7  ;;  %v1108_v14 = vor.u32 %v1107_v5, %v1104_v4  ;;  %v3177_v15 = vrot.slane %v3155_v44, 9  ;;  %v3437_v52 = vld [vmem:[%s4861_s1 + $0xa4] ss:$8 sps:$4 sm:$0xff]   ;;  %v3429_v5 = vld [vmem:[%s4861_s1] ss:$8 sps:$4 sm:$0xff]  }
  0x4c   : > { %v3123_v18 = vcombine.low %v515_v2, %v525_v12  ;;  %v1118_v19 = vor.u32 %v1117_v9, %v1113_v8  ;;  %v1123_v20 = vrot.slane %v1121_v10, 5  ;;  %v1302_v21 = vrot.slane %v3156_v50, 5  ;;  %v3160_v61 = vld [vmem:[%s3697_s30 + $0x2c] sm:$0x1]  ;;  %v3915_v4 = vld [vmem:[%s3697_s30 + $0x24] sm:$0xf]  ;;  %888 = vmatpush1.bf16.msra.mxu0 %v3424_v46  ;;  %1620 = vmatprep.subr.bf16.mxu1 %v3437_v52 }
  0x4d   : > { %711 = vrot.lane.b32.xlu1 %v3131_v13, %s3629_s7  ;;  %v1109_v26 = vrot.slane %v1108_v14, 4  ;;  %v1305_v27 = vrot.slane %v3157_v58, 5  ;;  %v1817_v28 = vshrl.u32 %v3849_v11, 16  ;;  %v1820_v29 = vshll.u32 %v3849_v11, 16  ;;  %v3441_v58 = vld [vmem:[%s4861_s1 + $0x94] ss:$8 sps:$4 sm:$0xff]   ;;  %889 = vmatprep.subr.bf16.mxu0 %v3426_v47 }
  0x4e   : > { %671 = vrot.lane.b32.xlu0 %v3123_v18, %s3628_s6  ;;  %v1119_v31 = vrot.slane %v1118_v19, 4  ;;  %v1303_v32 = vsel %vm3707_vm4, %v3177_v15, %v1302_v21  ;;  %v1304_v33 = vrot.slane %v1302_v21, 4  ;;  %v1826_v34 = vshll.u32 %v3241_v16, 16  ;;  %v3432_v10 = vld [vmem:[%s4861_s1 + $0x114] ss:$8 sps:$4 sm:$0xff]   ;;  %1621 = vmatpush1.bf16.msra.mxu1 %v3439_v53 }
  0x4f   : > { %v1114_v37 = vsel %vm3713_vm5, %v1109_v26, %v1113_v8  ;;  %v1819_v38 = vrot.slane %v1817_v28, 4  ;;  %v1822_v39 = vrot.slane %v1820_v29, 5  ;;  %v1830_v40 = vshrl.u32 %v3241_v16, 16  ;;  %1622 = vmatprep.subr.bf16.mxu1 %v3441_v58  ;;  %v3443_v15 = vld [vmem:[%s4861_s1 + $0x90] ss:$8 sps:$4 sm:$0xff]  }
  0x50   : > { %v1124_v42 = vsel %vm3713_vm5, %v1119_v31, %v1123_v20  ;;  %v1306_v43 = vsel %vm3707_vm4, %v1304_v33, %v1305_v27  ;;  %v1828_v44 = vrot.slane %v1826_v34, 5  ;;  %v1836_v45 = vshll.u32 %v3855_v17, 16  ;;  %v3244_v20 = vld [vmem:[%s3697_s30 + $0x28] sm:$0xf]  ;;  %v3448_v21 = vld [vmem:[%s4861_s1 + $0x84] ss:$8 sps:$4 sm:$0xff]   ;;  %890 = vmatpush1.bf16.msra.mxu0 %v3429_v5 }
  0x51   : > { %v3193_v48 = vcombine.low %v1114_v37, %v1124_v42  ;;  %v3201_v49 = vcombine.low %v1303_v32, %v1306_v43  ;;  %v1823_v50 = vor.u32 %v1822_v39, %v1819_v38  ;;  %v1832_v51 = vrot.slane %v1830_v40, 4  ;;  %2357 = vmatprep.subr.bf16.mxu0 %v3432_v10  ;;  %v3450_v37 = vld [vmem:[%s4861_s1 + $0x80] ss:$8 sps:$4 sm:$0xff]   ;;  %v3951_v42 = vld [vmem:[%s3697_s30 + $0x30] sm:$0xf] }
  0x52   : > { %v1838_v54 = vrot.slane %v1836_v45, 5  ;;  %v3264_v55 = vrot.slane %v3849_v11, 9  ;;  %v2034_v56 = vrot.slane %v3241_v16, 5  ;;  %v2037_v57 = vrot.slane %v3855_v17, 5  ;;  %1623 = vmatpush1.bf16.msra.mxu1 %v3443_v15  ;;  %v3958_v47 = vld [vmem:[%s3697_s30 + $0x34] sm:$0xf] }
  0x53   : > { %1399 = vrot.lane.b32.xlu0 %v3193_v48, %s3628_s6  ;;  %1439 = vrot.lane.b32.xlu1 %v3201_v49, %s3629_s7  ;;  %v1824_v59 = vrot.slane %v1823_v50, 4  ;;  %v1833_v60 = vor.u32 %v1832_v51, %v1828_v44  ;;  %v1126_v62 = vshrl.u32 %v3873_v35, 16  ;;  %v1129_v63 = vshll.u32 %v3873_v35, 16  ;;  %v3452_v48 = vld [vmem:[%s4861_s1 + $0x74] ss:$8 sps:$4 sm:$0xff]  }
  0x54   : > { %v2035_v0 = vsel %vm3707_vm4, %v3264_v55, %v2034_v56  ;;  %v2036_v1 = vrot.slane %v2034_v56, 4  ;;  %v1135_v2 = vshll.u32 %v3881_v41, 16  ;;  %v1139_v3 = vshrl.u32 %v3881_v41, 16  ;;  %1624 = vmatprep.subr.bf16.mxu1 %v3448_v21  ;;  %v3163_v53 = vld [vmem:[%s3697_s30 + $0x38] sm:$0x1] }
  0x55   : > { %v1829_v6 = vsel %vm3713_vm5, %v1824_v59, %v1828_v44  ;;  %v1834_v7 = vrot.slane %v1833_v60, 4  ;;  %v1128_v8 = vrot.slane %v1126_v62, 4  ;;  %v1131_v9 = vrot.slane %v1129_v63, 5  ;;  %v3456_v55 = vld [vmem:[%s4861_s1 + $0x64] ss:$8 sps:$4 sm:$0xff]  }
  0x56   : > { %v2038_v11 = vsel %vm3707_vm4, %v2036_v1, %v2037_v57  ;;  %v1137_v12 = vrot.slane %v1135_v2, 5  ;;  %v1141_v13 = vrot.slane %v1139_v3, 4  ;;  %v1145_v14 = vshll.u32 %v3160_v61, 16  ;;  %1625 = vmatpush1.bf16.msra.mxu1 %v3450_v37  ;;  %v3461_v5 = vld [vmem:[%s4861_s1 + $0x60] ss:$8 sps:$4 sm:$0xff]  }
  0x57   : > { %v1839_v16 = vsel %vm3713_vm5, %v1834_v7, %v1838_v54  ;;  %v3288_v17 = vcombine.low %v2035_v0, %v2038_v11  ;;  %v1132_v18 = vor.u32 %v1131_v9, %v1128_v8  ;;  %v3178_v19 = vrot.slane %v3873_v35, 9  ;;  %v3454_v54 = vld [vmem:[%s4861_s1 + $0x70] ss:$8 sps:$4 sm:$0xff]   ;;  %1626 = vmatprep.subr.bf16.mxu1 %v3452_v48  ;;  %v3988_v10 = vld [vmem:[%s3697_s30 + $0x34] sm:$0xf] }
  0x58   : > { %v3280_v22 = vcombine.low %v1829_v6, %v1839_v16  ;;  %v1142_v23 = vor.u32 %v1141_v13, %v1137_v12  ;;  %v1147_v26 = vrot.slane %v1145_v14, 5  ;;  %v1309_v27 = vrot.slane %v3881_v41, 5 }
  0x59   : > { %2176 = vrot.lane.b32.xlu1 %v3288_v17, %s3629_s7  ;;  %v1133_v28 = vrot.slane %v1132_v18, 4  ;;  %v1312_v29 = vrot.slane %v3160_v61, 5  ;;  %v1841_v31 = vshrl.u32 %v3915_v4, 16  ;;  %v1844_v32 = vshll.u32 %v3915_v4, 16 }
  0x5a   : > { %2136 = vrot.lane.b32.xlu0 %v3280_v22, %s3628_s6  ;;  %v1143_v33 = vrot.slane %v1142_v23, 4  ;;  %v1310_v34 = vsel %vm3707_vm4, %v3178_v19, %v1309_v27  ;;  %v1311_v35 = vrot.slane %v1309_v27, 4  ;;  %v1850_v36 = vshll.u32 %v3244_v20, 16  ;;  %1627 = vmatpush1.bf16.msra.mxu1 %v3454_v54  ;;  %v3248_v19 = vld [vmem:[%s3697_s30 + $0x38] sm:$0x1] }
  0x5b   : > { %v1138_v38 = vsel %vm3713_vm5, %v1133_v28, %v1137_v12  ;;  %v1843_v39 = vrot.slane %v1841_v31, 4  ;;  %v1846_v40 = vrot.slane %v1844_v32, 5  ;;  %v1854_v41 = vshrl.u32 %v3244_v20, 16  ;;  %1628 = vmatprep.subr.bf16.mxu1 %v3456_v55 }
  0x5c   : > { %v1148_v43 = vsel %vm3713_vm5, %v1143_v33, %v1147_v26  ;;  %v1313_v44 = vsel %vm3707_vm4, %v1311_v35, %v1312_v29  ;;  %v1852_v45 = vrot.slane %v1850_v36, 5  ;;  %v1860_v46 = vshll.u32 %v3245_v30, 16 }
  0x5d   : > { %v3194_v49 = vcombine.low %v1138_v38, %v1148_v43  ;;  %v3202_v50 = vcombine.low %v1310_v34, %v1313_v44  ;;  %v1847_v51 = vor.u32 %v1846_v40, %v1843_v39  ;;  %v1856_v52 = vrot.slane %v1854_v41, 4  ;;  %v4005_v34 = vld [vmem:[%s3697_s30 + $0x3c] sm:$0xf]  ;;  %v4011_v39 = vld [vmem:[%s3697_s30 + $0x40] sm:$0xf] }
  0x5e   : > { %v1862_v56 = vrot.slane %v1860_v46, 5  ;;  %v3265_v57 = vrot.slane %v3915_v4, 9  ;;  %v2041_v58 = vrot.slane %v3244_v20, 5  ;;  %v2044_v59 = vrot.slane %v3245_v30, 5  ;;  %v3980_v4 = vld [vmem:[%s3697_s30 + $0x30] sm:$0xf]  ;;  %1629 = vmatpush1.bf16.msra.mxu1 %v3461_v5 }
  0x5f   : > { %1401 = vrot.lane.b32.xlu0 %v3194_v49, %s3628_s6  ;;  %1441 = vrot.lane.b32.xlu1 %v3202_v50, %s3629_s7  ;;  %v1848_v60 = vrot.slane %v1847_v51, 4  ;;  %v1857_v61 = vor.u32 %v1856_v52, %v1852_v45  ;;  %v1150_v62 = vshrl.u32 %v3951_v42, 16  ;;  %v1153_v63 = vshll.u32 %v3951_v42, 16  ;;  %v3166_v50 = vld [vmem:[%s3697_s30 + $0x44] sm:$0x1] }
  0x60   : > { %v2042_v0 = vsel %vm3707_vm4, %v3265_v57, %v2041_v58  ;;  %v2043_v1 = vrot.slane %v2041_v58, 4  ;;  %v1159_v2 = vshll.u32 %v3958_v47, 16  ;;  %v1163_v3 = vshrl.u32 %v3958_v47, 16 }
  0x61   : > { %v1853_v6 = vsel %vm3713_vm5, %v1848_v60, %v1852_v45  ;;  %v1858_v7 = vrot.slane %v1857_v61, 4  ;;  %v1152_v8 = vrot.slane %v1150_v62, 4  ;;  %v1155_v9 = vrot.slane %v1153_v63, 5  ;;  %v4029_v63 = vld [vmem:[%s3697_s30 + $0x3c] sm:$0xf] }
  0x62   : > { %v2045_v11 = vsel %vm3707_vm4, %v2043_v1, %v2044_v59  ;;  %v1161_v12 = vrot.slane %v1159_v2, 5  ;;  %v1165_v13 = vrot.slane %v1163_v3, 4  ;;  %v1169_v14 = vshll.u32 %v3163_v53, 16 }
  0x63   : > { %v1863_v15 = vsel %vm3713_vm5, %v1858_v7, %v1862_v56  ;;  %v3289_v16 = vcombine.low %v2042_v0, %v2045_v11  ;;  %v1156_v17 = vor.u32 %v1155_v9, %v1152_v8  ;;  %v3179_v18 = vrot.slane %v3951_v42, 9 }
  0x64   : > { %v3281_v20 = vcombine.low %v1853_v6, %v1863_v15  ;;  %v1166_v21 = vor.u32 %v1165_v13, %v1161_v12  ;;  %v1171_v22 = vrot.slane %v1169_v14, 5  ;;  %v1316_v23 = vrot.slane %v3958_v47, 5  ;;  %v4039_v14 = vld [vmem:[%s3697_s30 + $0x40] sm:$0xf] }
  0x65   : > { %2178 = vrot.lane.b32.xlu1 %v3289_v16, %s3629_s7  ;;  %v1157_v26 = vrot.slane %v1156_v17, 4  ;;  %v1319_v27 = vrot.slane %v3163_v53, 5  ;;  %v1865_v28 = vshrl.u32 %v3980_v4, 16  ;;  %v1868_v29 = vshll.u32 %v3980_v4, 16 }
  0x66   : > { %2138 = vrot.lane.b32.xlu0 %v3281_v20, %s3628_s6  ;;  %v1167_v30 = vrot.slane %v1166_v21, 4  ;;  %v1317_v31 = vsel %vm3707_vm4, %v3179_v18, %v1316_v23  ;;  %v1318_v32 = vrot.slane %v1316_v23, 4  ;;  %v1874_v33 = vshll.u32 %v3988_v10, 16  ;;  %v3251_v21 = vld [vmem:[%s3697_s30 + $0x44] sm:$0x1] }
  0x67   : > { %v1162_v35 = vsel %vm3713_vm5, %v1157_v26, %v1161_v12  ;;  %v1867_v36 = vrot.slane %v1865_v28, 4  ;;  %v1870_v37 = vrot.slane %v1868_v29, 5  ;;  %v1878_v38 = vshrl.u32 %v3988_v10, 16 }
  0x68   : > { %v1172_v40 = vsel %vm3713_vm5, %v1167_v30, %v1171_v22  ;;  %v1320_v41 = vsel %vm3707_vm4, %v1318_v32, %v1319_v27  ;;  %v1876_v43 = vrot.slane %v1874_v33, 5  ;;  %v1884_v44 = vshll.u32 %v3248_v19, 16 }
  0x69   : > { %v3195_v45 = vcombine.low %v1162_v35, %v1172_v40  ;;  %v3203_v46 = vcombine.low %v1317_v31, %v1320_v41  ;;  %v1871_v48 = vor.u32 %v1870_v37, %v1867_v36  ;;  %v1880_v49 = vrot.slane %v1878_v38, 4  ;;  %v4058_v40 = vld [vmem:[%s3697_s30 + $0x48] sm:$0xf] }
  0x6a   : > { %v1886_v51 = vrot.slane %v1884_v44, 5  ;;  %v3266_v52 = vrot.slane %v3980_v4, 9  ;;  %v2048_v53 = vrot.slane %v3988_v10, 5  ;;  %v2051_v54 = vrot.slane %v3248_v19, 5 }
  0x6b   : > { %1403 = vrot.lane.b32.xlu0 %v3195_v45, %s3628_s6  ;;  %1443 = vrot.lane.b32.xlu1 %v3203_v46, %s3629_s7  ;;  %v1872_v55 = vrot.slane %v1871_v48, 4  ;;  %v1881_v56 = vor.u32 %v1880_v49, %v1876_v43  ;;  %v1174_v57 = vshrl.u32 %v4005_v34, 16  ;;  %v1177_v58 = vshll.u32 %v4005_v34, 16  ;;  %v4061_v46 = vld [vmem:[%s3697_s30 + $0x4c] sm:$0xf] }
  0x6c   : > { %v2049_v59 = vsel %vm3707_vm4, %v3266_v52, %v2048_v53  ;;  %v2050_v60 = vrot.slane %v2048_v53, 4  ;;  %v1183_v61 = vshll.u32 %v4011_v39, 16  ;;  %v1187_v62 = vshrl.u32 %v4011_v39, 16 }
  0x6d   : > { %v1877_v0 = vsel %vm3713_vm5, %v1872_v55, %v1876_v43  ;;  %v1882_v1 = vrot.slane %v1881_v56, 4  ;;  %v1176_v2 = vrot.slane %v1174_v57, 4  ;;  %v1179_v3 = vrot.slane %v1177_v58, 5 }
  0x6e   : > { %v2052_v5 = vsel %vm3707_vm4, %v2050_v60, %v2051_v54  ;;  %v1185_v6 = vrot.slane %v1183_v61, 5  ;;  %v1189_v7 = vrot.slane %v1187_v62, 4  ;;  %v1193_v8 = vshll.u32 %v3166_v50, 16  ;;  %v3169_v54 = vld [vmem:[%s3697_s30 + $0x50] sm:$0x1] }
  0x6f   : > { %v1887_v9 = vsel %vm3713_vm5, %v1882_v1, %v1886_v51  ;;  %v3290_v11 = vcombine.low %v2049_v59, %v2052_v5  ;;  %v1180_v12 = vor.u32 %v1179_v3, %v1176_v2  ;;  %v3180_v13 = vrot.slane %v4005_v34, 9 }
  0x70   : > { %v3282_v15 = vcombine.low %v1877_v0, %v1887_v9  ;;  %v1190_v16 = vor.u32 %v1189_v7, %v1185_v6  ;;  %v1195_v17 = vrot.slane %v1193_v8, 5  ;;  %v1323_v18 = vrot.slane %v4011_v39, 5  ;;  %v4079_v7 = vld [vmem:[%s3697_s30 + $0x48] sm:$0xf] }
  0x71   : > { %2180 = vrot.lane.b32.xlu1 %v3290_v11, %s3629_s7  ;;  %v1181_v19 = vrot.slane %v1180_v12, 4  ;;  %v1326_v20 = vrot.slane %v3166_v50, 5  ;;  %v1889_v22 = vshrl.u32 %v4029_v63, 16  ;;  %v1892_v23 = vshll.u32 %v4029_v63, 16 }
  0x72   : > { %2140 = vrot.lane.b32.xlu0 %v3282_v15, %s3628_s6  ;;  %v1191_v26 = vrot.slane %v1190_v16, 4  ;;  %v1324_v27 = vsel %vm3707_vm4, %v3180_v13, %v1323_v18  ;;  %v1325_v28 = vrot.slane %v1323_v18, 4  ;;  %v1898_v29 = vshll.u32 %v4039_v14, 16  ;;  %v4085_v13 = vld [vmem:[%s3697_s30 + $0x4c] sm:$0xf] }
  0x73   : > { %v1186_v30 = vsel %vm3713_vm5, %v1181_v19, %v1185_v6  ;;  %v1891_v31 = vrot.slane %v1889_v22, 4  ;;  %v1894_v32 = vrot.slane %v1892_v23, 5  ;;  %v1902_v33 = vshrl.u32 %v4039_v14, 16 }
  0x74   : > { %v1196_v35 = vsel %vm3713_vm5, %v1191_v26, %v1195_v17  ;;  %v1327_v36 = vsel %vm3707_vm4, %v1325_v28, %v1326_v20  ;;  %v1900_v37 = vrot.slane %v1898_v29, 5  ;;  %v1908_v38 = vshll.u32 %v3251_v21, 16 }
  0x75   : > { %v3196_v41 = vcombine.low %v1186_v30, %v1196_v35  ;;  %v3204_v43 = vcombine.low %v1324_v27, %v1327_v36  ;;  %v1895_v44 = vor.u32 %v1894_v32, %v1891_v31  ;;  %v1904_v45 = vrot.slane %v1902_v33, 4 }
  0x76   : > { %v1910_v48 = vrot.slane %v1908_v38, 5  ;;  %v3267_v49 = vrot.slane %v4029_v63, 9  ;;  %v2055_v50 = vrot.slane %v4039_v14, 5  ;;  %v2058_v51 = vrot.slane %v3251_v21, 5  ;;  %v3254_v21 = vld [vmem:[%s3697_s30 + $0x50] sm:$0x1] }
  0x77   : > { %1405 = vrot.lane.b32.xlu0 %v3196_v41, %s3628_s6  ;;  %1445 = vrot.lane.b32.xlu1 %v3204_v43, %s3629_s7  ;;  %v1896_v52 = vrot.slane %v1895_v44, 4  ;;  %v1905_v53 = vor.u32 %v1904_v45, %v1900_v37  ;;  %v1198_v55 = vshrl.u32 %v4058_v40, 16  ;;  %v1201_v56 = vshll.u32 %v4058_v40, 16  ;;  %v4104_v41 = vld [vmem:[%s3697_s30 + $0x54] sm:$0xf] }
  0x78   : > { %v2056_v57 = vsel %vm3707_vm4, %v3267_v49, %v2055_v50  ;;  %v2057_v58 = vrot.slane %v2055_v50, 4  ;;  %v1207_v59 = vshll.u32 %v4061_v46, 16  ;;  %v1211_v60 = vshrl.u32 %v4061_v46, 16  ;;  %v4107_v49 = vld [vmem:[%s3697_s30 + $0x58] sm:$0xf] }
  0x79   : > { %v1901_v61 = vsel %vm3713_vm5, %v1896_v52, %v1900_v37  ;;  %v1906_v62 = vrot.slane %v1905_v53, 4  ;;  %v1200_v0 = vrot.slane %v1198_v55, 4  ;;  %v1203_v1 = vrot.slane %v1201_v56, 5  ;;  %v3172_v56 = vld [vmem:[%s3697_s30 + $0x5c] sm:$0x1] }
  0x7a   : > { %v2059_v2 = vsel %vm3707_vm4, %v2057_v58, %v2058_v51  ;;  %v1209_v3 = vrot.slane %v1207_v59, 5  ;;  %v1213_v5 = vrot.slane %v1211_v60, 4  ;;  %v1217_v6 = vshll.u32 %v3169_v54, 16 }
  0x7b   : > { %v1911_v8 = vsel %vm3713_vm5, %v1906_v62, %v1910_v48  ;;  %v3291_v9 = vcombine.low %v2056_v57, %v2059_v2  ;;  %v1204_v11 = vor.u32 %v1203_v1, %v1200_v0  ;;  %v3181_v12 = vrot.slane %v4058_v40, 9 }
  0x7c   : > { %v3283_v15 = vcombine.low %v1901_v61, %v1911_v8  ;;  %v1214_v16 = vor.u32 %v1213_v5, %v1209_v3  ;;  %v1219_v17 = vrot.slane %v1217_v6, 5  ;;  %v1330_v18 = vrot.slane %v4061_v46, 5 }
  0x7d   : > { %2182 = vrot.lane.b32.xlu1 %v3291_v9, %s3629_s7  ;;  %v1205_v19 = vrot.slane %v1204_v11, 4  ;;  %v1333_v20 = vrot.slane %v3169_v54, 5  ;;  %v1913_v22 = vshrl.u32 %v4079_v7, 16  ;;  %v1916_v23 = vshll.u32 %v4079_v7, 16  ;;  %v4125_v11 = vld [vmem:[%s3697_s30 + $0x54] sm:$0xf] }
  0x7e   : > { %2142 = vrot.lane.b32.xlu0 %v3283_v15, %s3628_s6  ;;  %v1215_v26 = vrot.slane %v1214_v16, 4  ;;  %v1331_v27 = vsel %vm3707_vm4, %v3181_v12, %v1330_v18  ;;  %v1332_v28 = vrot.slane %v1330_v18, 4  ;;  %v1922_v29 = vshll.u32 %v4085_v13, 16  ;;  %v4131_v18 = vld [vmem:[%s3697_s30 + $0x58] sm:$0xf] }
  0x7f   : > { %v1210_v30 = vsel %vm3713_vm5, %v1205_v19, %v1209_v3  ;;  %v1915_v31 = vrot.slane %v1913_v22, 4  ;;  %v1918_v32 = vrot.slane %v1916_v23, 5  ;;  %v1926_v33 = vshrl.u32 %v4085_v13, 16 }
  0x80   : > { %v1220_v35 = vsel %vm3713_vm5, %v1215_v26, %v1219_v17  ;;  %v1334_v36 = vsel %vm3707_vm4, %v1332_v28, %v1333_v20  ;;  %v1924_v37 = vrot.slane %v1922_v29, 5  ;;  %v1932_v38 = vshll.u32 %v3254_v21, 16 }
  0x81   : > { %v3197_v43 = vcombine.low %v1210_v30, %v1220_v35  ;;  %v3205_v44 = vcombine.low %v1331_v27, %v1334_v36  ;;  %v1919_v45 = vor.u32 %v1918_v32, %v1915_v31  ;;  %v1928_v48 = vrot.slane %v1926_v33, 4  ;;  %v3257_v27 = vld [vmem:[%s3697_s30 + $0x5c] sm:$0x1] }
  0x82   : > { %v1934_v50 = vrot.slane %v1932_v38, 5  ;;  %v3268_v51 = vrot.slane %v4079_v7, 9  ;;  %v2062_v52 = vrot.slane %v4085_v13, 5  ;;  %v2065_v53 = vrot.slane %v3254_v21, 5 }
  0x83   : > { %1407 = vrot.lane.b32.xlu0 %v3197_v43, %s3628_s6  ;;  %1447 = vrot.lane.b32.xlu1 %v3205_v44, %s3629_s7  ;;  %v1920_v54 = vrot.slane %v1919_v45, 4  ;;  %v1929_v55 = vor.u32 %v1928_v48, %v1924_v37  ;;  %v1222_v57 = vshrl.u32 %v4104_v41, 16  ;;  %v1225_v58 = vshll.u32 %v4104_v41, 16 }
  0x84   : > { %v2063_v59 = vsel %vm3707_vm4, %v3268_v51, %v2062_v52  ;;  %v2064_v60 = vrot.slane %v2062_v52, 4  ;;  %v1231_v61 = vshll.u32 %v4107_v49, 16  ;;  %v1235_v62 = vshrl.u32 %v4107_v49, 16 }
  0x85   : > { %v1925_v0 = vsel %vm3713_vm5, %v1920_v54, %v1924_v37  ;;  %v1930_v1 = vrot.slane %v1929_v55, 4  ;;  %v1224_v2 = vrot.slane %v1222_v57, 4  ;;  %v1227_v3 = vrot.slane %v1225_v58, 5  ;;  %v4153_v55 = vld [vmem:[%s3697_s30 + $0x64] sm:$0xf] }
  0x86   : > { %v2066_v5 = vsel %vm3707_vm4, %v2064_v60, %v2065_v53  ;;  %v1233_v6 = vrot.slane %v1231_v61, 5  ;;  %v1237_v8 = vrot.slane %v1235_v62, 4  ;;  %v1241_v9 = vshll.u32 %v3172_v56, 16  ;;  %v3175_v62 = vld [vmem:[%s3697_s30 + $0x68] sm:$0x1] }
  0x87   : > { %v1935_v12 = vsel %vm3713_vm5, %v1930_v1, %v1934_v50  ;;  %v3292_v15 = vcombine.low %v2063_v59, %v2066_v5  ;;  %v1228_v16 = vor.u32 %v1227_v3, %v1224_v2  ;;  %v3182_v17 = vrot.slane %v4104_v41, 9  ;;  %v4150_v50 = vld [vmem:[%s3697_s30 + $0x60] sm:$0xf] }
  0x88   : > { %v3284_v19 = vcombine.low %v1925_v0, %v1935_v12  ;;  %v1238_v20 = vor.u32 %v1237_v8, %v1233_v6  ;;  %v1243_v21 = vrot.slane %v1241_v9, 5  ;;  %v1337_v22 = vrot.slane %v4107_v49, 5 }
  0x89   : > { %2184 = vrot.lane.b32.xlu1 %v3292_v15, %s3629_s7  ;;  %v1229_v23 = vrot.slane %v1228_v16, 4  ;;  %v1340_v26 = vrot.slane %v3172_v56, 5  ;;  %v1937_v28 = vshrl.u32 %v4125_v11, 16  ;;  %v1940_v29 = vshll.u32 %v4125_v11, 16 }
  0x8a   : > { %2144 = vrot.lane.b32.xlu0 %v3284_v19, %s3628_s6  ;;  %v1239_v30 = vrot.slane %v1238_v20, 4  ;;  %v1338_v31 = vsel %vm3707_vm4, %v3182_v17, %v1337_v22  ;;  %v1339_v32 = vrot.slane %v1337_v22, 4  ;;  %v1946_v33 = vshll.u32 %v4131_v18, 16 }
  0x8b   : > { %v1234_v35 = vsel %vm3713_vm5, %v1229_v23, %v1233_v6  ;;  %v1939_v36 = vrot.slane %v1937_v28, 4  ;;  %v1942_v37 = vrot.slane %v1940_v29, 5  ;;  %v1950_v38 = vshrl.u32 %v4131_v18, 16 }
  0x8c   : > { %v1244_v43 = vsel %vm3713_vm5, %v1239_v30, %v1243_v21  ;;  %v1341_v44 = vsel %vm3707_vm4, %v1339_v32, %v1340_v26  ;;  %v1948_v45 = vrot.slane %v1946_v33, 5  ;;  %v1956_v48 = vshll.u32 %v3257_v27, 16  ;;  %v4177_v33 = vld [vmem:[%s3697_s30 + $0x60] sm:$0xf] }
  0x8d   : > { %v3198_v51 = vcombine.low %v1234_v35, %v1244_v43  ;;  %v3206_v52 = vcombine.low %v1338_v31, %v1341_v44  ;;  %v1943_v53 = vor.u32 %v1942_v37, %v1939_v36  ;;  %v1952_v54 = vrot.slane %v1950_v38, 4  ;;  %v3562_v37 = vld [vmem:[%s3697_s30] sm:$0xf]  ;;  %v3563_v38 = vld [vmem:[%s3697_s30 + $0x4] sm:$0xf] }
  0x8e   : > { %v1958_v56 = vrot.slane %v1956_v48, 5  ;;  %v3269_v57 = vrot.slane %v4125_v11, 9  ;;  %v2069_v58 = vrot.slane %v4131_v18, 5  ;;  %v2072_v59 = vrot.slane %v3257_v27, 5  ;;  %v4183_v44 = vld [vmem:[%s3697_s30 + $0x64] sm:$0xf] }
  0x8f   : > { %1409 = vrot.lane.b32.xlu0 %v3198_v51, %s3628_s6  ;;  %1449 = vrot.lane.b32.xlu1 %v3206_v52, %s3629_s7  ;;  %v1944_v60 = vrot.slane %v1943_v53, 4  ;;  %v1953_v61 = vor.u32 %v1952_v54, %v1948_v45  ;;  %v1246_v0 = vshrl.u32 %v4150_v50, 16  ;;  %v1249_v1 = vshll.u32 %v4150_v50, 16  ;;  %v3260_v54 = vld [vmem:[%s3697_s30 + $0x68] sm:$0x1] }
  0x90   : > { %v2070_v2 = vsel %vm3707_vm4, %v3269_v57, %v2069_v58  ;;  %v2071_v3 = vrot.slane %v2069_v58, 4  ;;  %v1255_v5 = vshll.u32 %v4153_v55, 16  ;;  %v1259_v6 = vshrl.u32 %v4153_v55, 16  ;;  %v658_v8 = vpop.permute.xlu0 %657 }
  0x91   : > { %v1949_v9 = vsel %vm3713_vm5, %v1944_v60, %v1948_v45  ;;  %v1954_v12 = vrot.slane %v1953_v61, 4  ;;  %v1248_v15 = vrot.slane %v1246_v0, 4  ;;  %v1251_v16 = vrot.slane %v1249_v1, 5 }
  0x92   : > { %v2073_v17 = vsel %vm3707_vm4, %v2071_v3, %v2072_v59  ;;  %v1257_v19 = vrot.slane %v1255_v5, 5  ;;  %v1261_v20 = vrot.slane %v1259_v6, 4  ;;  %v1265_v21 = vshll.u32 %v3175_v62, 16 }
  0x93   : > { %v1959_v22 = vsel %vm3713_vm5, %v1954_v12, %v1958_v56  ;;  %v3293_v23 = vcombine.low %v2070_v2, %v2073_v17  ;;  %v1252_v26 = vor.u32 %v1251_v16, %v1248_v15  ;;  %v3183_v27 = vrot.slane %v4150_v50, 9  ;;  %v4207_v17 = vld [vmem:[%s3697_s30 + $0x6c] sm:$0xf] }
  0x94   : > { %v3285_v28 = vcombine.low %v1949_v9, %v1959_v22  ;;  %v1262_v29 = vor.u32 %v1261_v20, %v1257_v19  ;;  %v1267_v30 = vrot.slane %v1265_v21, 5  ;;  %v1344_v31 = vrot.slane %v4153_v55, 5  ;;  %v4174_v32 = vpop.permute.xlu1 %659  ;;  %v698_v52 = vpop.permute.xlu0 %697  ;;  %v3430_v21 = vld [vmem:[%s4861_s1 + $0x110] ss:$8 sps:$4 sm:$0xff]  }
  0x95   : > { %2186 = vrot.lane.b32.xlu1 %v3293_v23, %s3629_s7  ;;  %v1253_v35 = vrot.slane %v1252_v26, 4  ;;  %v1347_v36 = vrot.slane %v3175_v62, 5  ;;  %v3108_v43 = vcombine.low %v3562_v37, %v3563_v38  ;;  %v1961_v56 = vshrl.u32 %v4177_v33, 16  ;;  %v4218_v26 = vld [vmem:[%s3697_s30 + $0x70] sm:$0xf] }
  0x96   : > { %2146 = vrot.lane.b32.xlu0 %v3285_v28, %s3628_s6  ;;  %v1263_v45 = vrot.slane %v1262_v29, 4  ;;  %v1345_v48 = vsel %vm3707_vm4, %v3183_v27, %v1344_v31  ;;  %v1346_v51 = vrot.slane %v1344_v31, 4  ;;  %v1964_v57 = vshll.u32 %v4177_v33, 16  ;;  %v3564_v27 = vld [vmem:[%s3697_s30 + $0xc] sm:$0xf] }
  0x97   : > { %v1258_v53 = vsel %vm3713_vm5, %v1253_v35, %v1257_v19  ;;  %v715_v60 = vsel %vm275_vm6, %v3108_v43, %v658_v8  ;;  %v1970_v61 = vshll.u32 %v4183_v44, 16  ;;  %v1963_v2 = vrot.slane %v1961_v56, 4  ;;  %v3565_v28 = vld [vmem:[%s3697_s30 + $0x10] sm:$0xf]  ;;  %v3446_v37 = vld [vmem:[%s4861_s1 + $0x104] ss:$8 sps:$4 sm:$0xff]  }
  0x98   : > { %v1268_v58 = vsel %vm3713_vm5, %v1263_v45, %v1267_v30  ;;  %v1348_v59 = vsel %vm3707_vm4, %v1346_v51, %v1347_v36  ;;  %v4199_v62 = vpop.permute.xlu1 %699  ;;  %v1966_v3 = vrot.slane %v1964_v57, 5  ;;  %v1974_v6 = vshrl.u32 %v4183_v44, 16  ;;  %v3263_v51 = vld [vmem:[%s3697_s30 + $0x74] sm:$0x1] }
  0x99   : > { %v3199_v0 = vcombine.low %v1258_v53, %v1268_v58  ;;  %v3207_v1 = vcombine.low %v1345_v48, %v1348_v59  ;;  %v1972_v5 = vrot.slane %v1970_v61, 5  ;;  %v1980_v9 = vshll.u32 %v3260_v54, 16  ;;  %v3444_v59 = vld [vmem:[%s4861_s1 + $0x100] ss:$8 sps:$4 sm:$0xff]  }
  0x9a   : > { %v3270_v12 = vrot.slane %v4177_v33, 9  ;;  %v1967_v8 = vor.u32 %v1966_v3, %v1963_v2  ;;  %v2076_v15 = vrot.slane %v4183_v44, 5  ;;  %v2079_v16 = vrot.slane %v3260_v54, 5  ;;  %v3460_v3 = vld [vmem:[%s4861_s1 + $0xf4] ss:$8 sps:$4 sm:$0xff]  }
  0x9b   : > { %1411 = vrot.lane.b32.xlu0 %v3199_v0, %s3628_s6  ;;  %1451 = vrot.lane.b32.xlu1 %v3207_v1, %s3629_s7  ;;  %v1976_v19 = vrot.slane %v1974_v6, 4  ;;  %v739_v20 = vsel %vm737_vm7, %v715_v60, %v698_v52  ;;  %v3109_v29 = vcombine.low %v3564_v27, %v3565_v28  ;;  %v3630_v36 = vmov 0  }
  0x9c   : > { %v4213_v22 = vpop.permute.xlu0 %661  ;;  %v4215_v23 = vpop.permute.xlu1 %701  ;;  %v1968_v30 = vrot.slane %v1967_v8, 4  ;;  %v2077_v31 = vsel %vm3707_vm4, %v3270_v12, %v2076_v15  ;;  %v2078_v35 = vrot.slane %v2076_v15, 4  ;;  %907 = vmatprep.mubr.bf16.mxu0 %v3630_v36  ;;  %1646 = vmatprep.mubr.bf16.mxu1 %v3630_v36  ;;  %v1982_v43 = vrot.slane %v1980_v9, 5 }
  0x9d   : > { %v1977_v38 = vor.u32 %v1976_v19, %v1972_v5  ;;  %v1985_v45 = vshrl.u32 %v4207_v17, 16  ;;  %2721 = vmatprep.subr.bf16.mxu1 %v3630_v36  ;;  %3144 = vmatmul.mubr.msk.bf16.vlgmr.msra.gmra.mxu0 %vm858_vm8, %v739_v20  ;;  %v1988_v52 = vshll.u32 %v4207_v17, 16  ;;  %v1994_v53 = vshll.u32 %v4218_v26, 16  ;;  %v3566_v20 = vld [vmem:[%s3697_s30 + $0x18] sm:$0xf] }
  0x9e   : > { %v2080_v48 = vsel %vm3707_vm4, %v2078_v35, %v2079_v16  ;;  %v1973_v54 = vsel %vm3713_vm5, %v1968_v30, %v1972_v5  ;;  %2358 = vmatpush1.bf16.msra.mxu0 %v3430_v21  ;;  %917 = vmatprep.mubr.bf16.mxu0 %v3630_v36  ;;  %v718_v60 = vsel %vm275_vm6, %v3109_v29, %v4174_v32  ;;  %v1998_v1 = vshrl.u32 %v4218_v26, 16  ;;  %v3567_v21 = vld [vmem:[%s3697_s30 + $0x1c] sm:$0xf]  ;;  %v3458_v30 = vld [vmem:[%s4861_s1 + $0xf0] ss:$8 sps:$4 sm:$0xff]  }
  0x9f   : > { %v1978_v56 = vrot.slane %v1977_v38, 4  ;;  %v3294_v57 = vcombine.low %v2077_v31, %v2080_v48  ;;  %v1987_v58 = vrot.slane %v1985_v45, 4  ;;  %v1990_v61 = vrot.slane %v1988_v52, 5  ;;  %2359 = vmatprep.subr.bf16.mxu0 %v3446_v37  ;;  %v3467_v38 = vld [vmem:[%s4861_s1 + $0xe4] ss:$8 sps:$4 sm:$0xff]  }
  0xa0   : > { %v1996_v0 = vrot.slane %v1994_v53, 5  ;;  %v2004_v6 = vshll.u32 %v3263_v51, 16  ;;  %v3271_v32 = vrot.slane %v4207_v17, 9  ;;  %v2083_v9 = vrot.slane %v4218_v26, 5 }
  0xa1   : > { %v4246_v2 = vpop.permute.xlu1 %703  ;;  %v1983_v5 = vsel %vm3713_vm5, %v1978_v56, %v1982_v43  ;;  %2188 = vrot.lane.b32.xlu1 %v3294_v57, %s3629_s7  ;;  %v4256_v12 = vpop.permute.xlu0 %663  ;;  %v1991_v15 = vor.u32 %v1990_v61, %v1987_v58  ;;  %v2000_v16 = vrot.slane %v1998_v1, 4  ;;  %v2086_v19 = vrot.slane %v3263_v51, 5 }
  0xa2   : > { %v3286_v8 = vcombine.low %v1973_v54, %v1983_v5  ;;  %v3110_v27 = vcombine.low %v3566_v20, %v3567_v21  ;;  %v2084_v28 = vsel %vm3707_vm4, %v3271_v32, %v2083_v9  ;;  %v2085_v29 = vrot.slane %v2083_v9, 4  ;;  %2360 = vmatpush1.bf16.msra.mxu0 %v3444_v59  ;;  %v3569_v32 = vld [vmem:[%s3697_s30 + $0x28] sm:$0xf] }
  0xa3   : > { %v1992_v31 = vrot.slane %v1991_v15, 4  ;;  %v2001_v35 = vor.u32 %v2000_v16, %v1996_v0  ;;  %v2006_v37 = vrot.slane %v2004_v6, 5  ;;  %2361 = vmatprep.subr.bf16.mxu0 %v3460_v3  ;;  %v741_v43 = vsel %vm737_vm7, %v718_v60, %v4199_v62  ;;  %v3568_v6 = vld [vmem:[%s3697_s30 + $0x24] sm:$0xf] }
  0xa4   : > { %2148 = vrot.lane.b32.xlu0 %v3286_v8, %s3628_s6  ;;  %v2087_v45 = vsel %vm3707_vm4, %v2085_v29, %v2086_v19  ;;  %v721_v54 = vsel %vm275_vm6, %v3110_v27, %v4213_v22  ;;  %v264_v62 = vlaneseq  ;;  %v3472_v22 = vld [vmem:[%s4861_s1 + $0xd4] ss:$8 sps:$4 sm:$0xff]   ;;  %v3188_v60 = vcombine.low %v4005_v34, %v4011_v39  ;;  %v3478_v15 = vld [vmem:[%s4861_s1 + $0xc4] ss:$8 sps:$4 sm:$0xff]   ;;  %v3476_v29 = vld [vmem:[%s4861_s1 + $0xc0] ss:$8 sps:$4 sm:$0xff]  }
  0xa5   : > { %v1997_v48 = vsel %vm3713_vm5, %v1992_v31, %v1996_v0  ;;  %v2002_v51 = vrot.slane %v2001_v35, 4  ;;  %v3295_v52 = vcombine.low %v2084_v28, %v2087_v45  ;;  %3145 = vmatmul.mubr.msk.bf16.gmra.mxu0 %vm858_vm8, %v741_v43  ;;  %v743_v59 = vsel %vm737_vm7, %v721_v54, %v4215_v23  ;;  %v3470_v0 = vld [vmem:[%s4861_s1 + $0xd0] ss:$8 sps:$4 sm:$0xff]   ;;  %v4325_v28 = vld [vmem:[%s4862_s2] sm:$0x3] }
  0xa6   : > { %927 = vmatprep.mubr.bf16.mxu0 %v3630_v36  ;;  %2362 = vmatpush1.bf16.msra.mxu0 %v3458_v30  ;;  %v3275_v25 = vcombine.low %v4029_v63, %v4039_v14  ;;  %v3189_v61 = vcombine.low %v4058_v40, %v4061_v46  ;;  %v3276_v1 = vcombine.low %v4079_v7, %v4085_v13  ;;  %v4307_v5 = vshrl.u32 %v264_v62, 7  ;;  %v3570_v43 = vld [vmem:[%s3697_s30 + $0x30] sm:$0xf]  ;;  %v3571_v45 = vld [vmem:[%s3697_s30 + $0x34] sm:$0xf]  ;;  %v3488_v63 = vld [vmem:[%s4863_s3 + $0x38] sm:$0xff]  }
  0xa7   : > { %v706_v53 = vpop.permute.xlu1 %705  ;;  %v2007_v57 = vsel %vm3713_vm5, %v2002_v51, %v2006_v37  ;;  %2190 = vrot.lane.b32.xlu1 %v3295_v52, %s3629_s7  ;;  %2363 = vmatprep.subr.bf16.mxu0 %v3467_v38  ;;  %v3190_v23 = vcombine.low %v4104_v41, %v4107_v49  ;;  %v3277_v3 = vcombine.low %v4125_v11, %v4131_v18  ;;  %v3572_v51 = vld [vmem:[%s3697_s30 + $0xc] sm:$0xf]  ;;  %v3573_v52 = vld [vmem:[%s3697_s30 + $0x10] sm:$0xf]  ;;  %v3491_v18 = vld [vmem:[%s4863_s3 + $0x20] sm:$0xff]  }
  0xa8   : > { %v666_v56 = vpop.permute.xlu0 %665  ;;  %v3287_v58 = vcombine.low %v1997_v48, %v2007_v57  ;;  %v3111_v9 = vcombine.low %v3568_v6, %v3569_v32  ;;  %v3191_v16 = vcombine.low %v4150_v50, %v4153_v55  ;;  %v3278_v19 = vcombine.low %v4177_v33, %v4183_v44 }
  0xa9   : > { %v3279_v20 = vcombine.low %v4207_v17, %v4218_v26  ;;  %v266_v27 = vsub.s32 0, %v4307_v5  ;;  %v3112_v48 = vcombine.low %v3570_v43, %v3571_v45  ;;  %v3184_v54 = vcombine.low %v3572_v51, %v3573_v52  ;;  %v3494_v17 = vld [vmem:[%s4863_s3 + $0x8] sm:$0xff]   ;;  %v3495_v26 = vld [vmem:[%s4863_s3] sm:$0xff]  }
  0xaa   : > { %2150 = vrot.lane.b32.xlu0 %v3287_v58, %s3628_s6  ;;  %2364 = vmatpush1.bf16.msra.mxu0 %v3465_v24  ;;  %v724_v31 = vsel %vm275_vm6, %v3111_v9, %v4256_v12 }
  0xab   : > { %2365 = vmatprep.subr.bf16.mxu0 %v3472_v22  ;;  %v4332_v30 = vrot.slane %v4325_v28, %v266_v27  ;;  %v745_v37 = vsel %vm737_vm7, %v724_v31, %v4246_v2  ;;  %v727_v12 = vsel %vm275_vm6, %v3112_v48, %v666_v56  ;;  %v3577_v27 = vld [vmem:[%s3697_s30 + $0x1c] sm:$0xf]  ;;  %v3578_v31 = vld [vmem:[%s3697_s30 + $0x48] sm:$0xf] }
  0xac   : > { %v747_v58 = vsel %vm737_vm7, %v727_v12, %v706_v53 }
  0xad   : > { %v708_v8 = vpop.permute.xlu1 %707  ;;  %v668_v21 = vpop.permute.xlu0 %667  ;;  %3146 = vmatmul.mubr.msk.bf16.gmra.mxu0 %vm858_vm8, %v743_v59  ;;  %v3574_v59 = vld [vmem:[%s3697_s30 + $0x3c] sm:$0xf] }
  0xae   : > { %937 = vmatprep.mubr.bf16.mxu0 %v3630_v36  ;;  %2366 = vmatpush1.bf16.msra.mxu0 %v3470_v0  ;;  %v3575_v0 = vld [vmem:[%s3697_s30 + $0x40] sm:$0xf] }
  0xaf   : > { %2367 = vmatprep.subr.bf16.mxu0 %v3478_v15  ;;  %v3113_v6 = vcombine.low %v3574_v59, %v3575_v0  ;;  %v3576_v15 = vld [vmem:[%s3697_s30 + $0x18] sm:$0xf] }
  0xb1   : > { %v730_v9 = vsel %vm275_vm6, %v3113_v6, %v668_v21 }
  0xb2   : > { %2368 = vmatpush1.bf16.msra.mxu0 %v3476_v29  ;;  %v3185_v29 = vcombine.low %v3576_v15, %v3577_v27  ;;  %v749_v53 = vsel %vm737_vm7, %v730_v9, %v708_v8  ;;  %v3584_v27 = vld [vmem:[%s3697_s30 + $0x18] sm:$0xf] }
  0xb3   : > { %v710_v35 = vpop.permute.xlu1 %709 }
  0xb4   : > { %v670_v38 = vpop.permute.xlu0 %669 }
  0xb5   : > { %3147 = vmatmul.mubr.msk.bf16.gmra.mxu0 %vm858_vm8, %v745_v37  ;;  %v3579_v37 = vld [vmem:[%s3697_s30 + $0x4c] sm:$0xf] }
  0xb6   : > { %947 = vmatprep.mubr.bf16.mxu0 %v3630_v36  ;;  %v3114_v43 = vcombine.low %v3578_v31, %v3579_v37 }
  0xb8   : > { %v733_v8 = vsel %vm275_vm6, %v3114_v43, %v670_v38  ;;  %v3187_v43 = vcombine.low %v3951_v42, %v3958_v47 }
  0xb9   : > { %v1398_v24 = vpop.permute.xlu0 %1397  ;;  %v1438_v2 = vpop.permute.xlu1 %1437 }
  0xba   : > { %v1455_v57 = vsel %vm275_vm6, %v3184_v54, %v1398_v24  ;;  %v751_v54 = vsel %vm737_vm7, %v733_v8, %v710_v35  ;;  %v3580_v24 = vld [vmem:[%s3697_s30 + $0x54] sm:$0xf] }
  0xbb   : > { %v1478_v22 = vsel %vm737_vm7, %v1455_v57, %v1438_v2  ;;  %v3581_v2 = vld [vmem:[%s3697_s30 + $0x58] sm:$0xf] }
  0xbc   : > { %3232 = vmatmul.mubr.msk.bf16.vlgmr.msra.gmra.mxu1 %vm858_vm8, %v1478_v22  ;;  %v3115_v57 = vcombine.low %v3580_v24, %v3581_v2  ;;  %v3582_v22 = vld [vmem:[%s3697_s30 + $0x24] sm:$0xf] }
  0xbd   : > { %1656 = vmatprep.mubr.bf16.mxu1 %v3630_v36  ;;  %3148 = vmatmul.mubr.msk.bf16.gmra.mxu0 %vm858_vm8, %v747_v58  ;;  %v3583_v58 = vld [vmem:[%s3697_s30 + $0x28] sm:$0xf] }
  0xbe   : > { %957 = vmatprep.mubr.bf16.mxu0 %v3630_v36  ;;  %v3186_v59 = vcombine.low %v3582_v22, %v3583_v58  ;;  %2722 = vmatpush1.bf16.msra.mxu1 %v3488_v63 }
  0xbf   : > { %v712_v56 = vpop.permute.xlu1 %711  ;;  %2723 = vmatprep.subr.bf16.mxu1 %v3630_v36 }
  0xc0   : > { %v672_v32 = vpop.permute.xlu0 %671 }
  0xc1   : > { %v736_v38 = vsel %vm275_vm6, %v3115_v57, %v672_v32 }
  0xc2   : > { %v753_v15 = vsel %vm737_vm7, %v736_v38, %v712_v56 }
  0xc5   : > { %v1400_v45 = vpop.permute.xlu0 %1399  ;;  %v1440_v48 = vpop.permute.xlu1 %1439  ;;  %3149 = vmatmul.mubr.msk.bf16.gmra.mxu0 %vm858_vm8, %v749_v53 }
  0xc6   : > { %v1458_v51 = vsel %vm275_vm6, %v3185_v29, %v1400_v45  ;;  %967 = vmatprep.mubr.bf16.mxu0 %v3630_v36  ;;  %v3585_v29 = vld [vmem:[%s3697_s30 + $0x1c] sm:$0xf]  ;;  %v3586_v45 = vld [vmem:[%s3697_s30 + $0x24] sm:$0xf] }
  0xc7   : > { %v1480_v52 = vsel %vm737_vm7, %v1458_v51, %v1440_v48  ;;  %v3272_v53 = vcombine.low %v3584_v27, %v3585_v29  ;;  %v3587_v48 = vld [vmem:[%s3697_s30 + $0x28] sm:$0xf]  ;;  %v3489_v27 = vld [vmem:[%s4863_s3 + $0x30] sm:$0xff]  }
  0xc8   : > { %3233 = vmatmul.mubr.msk.bf16.gmra.mxu1 %vm858_vm8, %v1480_v52  ;;  %v3273_v51 = vcombine.low %v3586_v45, %v3587_v48  ;;  %v3497_v45 = vld [vmem:[%s4863_s3 + $0x40] sm:$0xff]  }
  0xc9   : > { %1666 = vmatprep.mubr.bf16.mxu1 %v3630_v36  ;;  %2724 = vmatpush1.bf16.msra.mxu1 %v3489_v27 }
  0xca   : > { %2725 = vmatprep.subr.bf16.mxu1 %v3630_v36 }
  0xcb   : > { %v2177_v21 = vpop.permute.xlu1 %2176 }
  0xcc   : > { %v2137_v12 = vpop.permute.xlu0 %2136 }
  0xcd   : > { %3150 = vmatmul.mubr.msk.bf16.gmra.mxu0 %vm858_vm8, %v751_v54  ;;  %v2194_v37 = vsel %vm275_vm6, %v3272_v53, %v2137_v12  ;;  %v270_v12 = vsub.s32 1, %v4307_v5  ;;  %v3274_v5 = vcombine.low %v3980_v4, %v3988_v10 }
  0xce   : > { %977 = vmatprep.mubr.bf16.mxu0 %v3630_v36  ;;  %v2217_v56 = vsel %vm737_vm7, %v2194_v37, %v2177_v21 }
  0xcf   : > { %v271_v47 = vrot.slane %v4325_v28, %v270_v12 }
  0xd1   : > { %v1402_v0 = vpop.permute.xlu0 %1401  ;;  %v1442_v6 = vpop.permute.xlu1 %1441  ;;  %276 = vst.msk [vmem:[#allocation2 + $0x8] sm:$0xff] %vm275_vm6, %v271_v47  ;;  %278 = vst.msk [vmem:[#allocation2 + $0x18] sm:$0xff] %vm275_vm6, %v271_v47 }
  0xd2   : > { %v1461_v35 = vsel %vm275_vm6, %v3186_v59, %v1402_v0  ;;  %280 = vst.msk [vmem:[#allocation2 + $0x28] sm:$0xff] %vm275_vm6, %v271_v47  ;;  %282 = vst.msk [vmem:[#allocation2 + $0x38] sm:$0xff] %vm275_vm6, %v271_v47 }
  0xd3   : > { %v1482_v9 = vsel %vm737_vm7, %v1461_v35, %v1442_v6  ;;  %284 = vst.msk [vmem:[#allocation2 + $0x48] sm:$0xff] %vm275_vm6, %v271_v47  ;;  %286 = vst.msk [vmem:[#allocation2 + $0x58] sm:$0xff] %vm275_vm6, %v271_v47 }
  0xd4   : > { %3234 = vmatmul.mubr.msk.bf16.gmra.mxu1 %vm858_vm8, %v1482_v9  ;;  %288 = vst.msk [vmem:[#allocation2 + $0x68] sm:$0xff] %vm275_vm6, %v271_v47  ;;  %290 = vst.msk [vmem:[#allocation2 + $0x78] sm:$0xff] %vm275_vm6, %v271_v47 }
  0xd5   : > { %1676 = vmatprep.mubr.bf16.mxu1 %v3630_v36  ;;  %3151 = vmatmul.mubr.msk.bf16.gmra.mxu0 %vm858_vm8, %v753_v15  ;;  %292 = vst.msk [vmem:[#allocation2 + $0x88] sm:$0xff] %vm275_vm6, %v271_v47  ;;  %294 = vst.msk [vmem:[#allocation2 + $0x98] sm:$0xff] %vm275_vm6, %v271_v47 }
  0xd6   : > { %2385 = vmatprep.mubr.bf16.mxu0 %v3630_v36  ;;  %296 = vst.msk [vmem:[#allocation2 + $0xa8] sm:$0xff] %vm275_vm6, %v271_v47  ;;  %298 = vst.msk [vmem:[#allocation2 + $0xb8] sm:$0xff] %vm275_vm6, %v271_v47 }
  0xd7   : > { %v2179_v31 = vpop.permute.xlu1 %2178  ;;  %300 = vst.msk [vmem:[#allocation2 + $0xc8] sm:$0xff] %vm275_vm6, %v271_v47  ;;  %302 = vst.msk [vmem:[#allocation2 + $0xd8] sm:$0xff] %vm275_vm6, %v271_v47 }
  0xd8   : > { %v2139_v32 = vpop.permute.xlu0 %2138  ;;  %304 = vst.msk [vmem:[#allocation2 + $0xe8] sm:$0xff] %vm275_vm6, %v271_v47  ;;  %306 = vst.msk [vmem:[#allocation2 + $0xf8] sm:$0xff] %vm275_vm6, %v271_v47 }
  0xd9   : > { %v2197_v42 = vsel %vm275_vm6, %v3273_v51, %v2139_v32  ;;  %v755_v51 = vld [vmem:[#allocation2 + $0x8] sm:$0xff] }
  0xda   : > { %v2219_v2 = vsel %vm737_vm7, %v2197_v42, %v2179_v31  ;;  %v3490_v31 = vld [vmem:[%s4863_s3 + $0x28] sm:$0xff]  }
  0xdb   : > { %2726 = vmatpush1.bf16.msra.mxu1 %v3490_v31 }
  0xdc   : > { %2727 = vmatprep.subr.bf16.mxu1 %v3630_v36 }
  0xdd   : > { %v1404_v52 = vpop.permute.xlu0 %1403  ;;  %v1444_v8 = vpop.permute.xlu1 %1443  ;;  %3320 = vmatmul.mubr.msk.bf16.vlgmr.msra.gmra.mxu0 %vm858_vm8, %v2217_v56 }
  0xde   : > { %v1464_v54 = vsel %vm275_vm6, %v3187_v43, %v1404_v52  ;;  %2395 = vmatprep.mubr.bf16.mxu0 %v3630_v36  ;;  %v3492_v43 = vld [vmem:[%s4863_s3 + $0x18] sm:$0xff]  }
  0xdf   : > { %v1484_v24 = vsel %vm737_vm7, %v1464_v54, %v1444_v8  ;;  %2728 = vmatpush1.bf16.msra.mxu1 %v3491_v18 }
  0xe0   : > { %3235 = vmatmul.mubr.msk.bf16.gmra.mxu1 %vm858_vm8, %v1484_v24  ;;  %2729 = vmatprep.subr.bf16.mxu1 %v3630_v36  ;;  %v757_v24 = vld [vmem:[#allocation2 + $0x18] sm:$0xff] }
  0xe1   : > { %1686 = vmatprep.mubr.bf16.mxu1 %v3630_v36 }
  0xe3   : > { %v2181_v21 = vpop.permute.xlu1 %2180  ;;  %2730 = vmatpush1.bf16.msra.mxu1 %v3492_v43 }
  0xe4   : > { %v2141_v57 = vpop.permute.xlu0 %2140  ;;  %2731 = vmatprep.subr.bf16.mxu1 %v3630_v36 }
  0xe5   : > { %3321 = vmatmul.mubr.msk.bf16.gmra.mxu0 %vm858_vm8, %v2219_v2  ;;  %v2200_v28 = vsel %vm275_vm6, %v3274_v5, %v2141_v57  ;;  %v761_v5 = vld [vmem:[#allocation2 + $0x38] sm:$0xff] }
  0xe6   : > { %2405 = vmatprep.mubr.bf16.mxu0 %v3630_v36  ;;  %v2221_v0 = vsel %vm737_vm7, %v2200_v28, %v2181_v21 }
  0xe9   : > { %v1406_v22 = vpop.permute.xlu0 %1405  ;;  %v1446_v58 = vpop.permute.xlu1 %1445 }
  0xea   : > { %v1467_v59 = vsel %vm275_vm6, %v3188_v60, %v1406_v22 }
  0xeb   : > { %v1486_v38 = vsel %vm737_vm7, %v1467_v59, %v1446_v58  ;;  %v763_v59 = vld [vmem:[#allocation2 + $0x48] sm:$0xff] }
  0xec   : > { %3236 = vmatmul.mubr.msk.bf16.gmra.mxu1 %vm858_vm8, %v1486_v38 }
  0xed   : > { %1696 = vmatprep.mubr.bf16.mxu1 %v3630_v36  ;;  %3322 = vmatmul.mubr.msk.bf16.gmra.mxu0 %vm858_vm8, %v2221_v0 }
  0xee   : > { %2415 = vmatprep.mubr.bf16.mxu0 %v3630_v36 }
  0xef   : > { %v2183_v4 = vpop.permute.xlu1 %2182 }
  0xf0   : > { %v2143_v10 = vpop.permute.xlu0 %2142 }
  0xf1   : > { %v2203_v34 = vsel %vm275_vm6, %v3275_v25, %v2143_v10  ;;  %v765_v10 = vld [vmem:[#allocation2 + $0x58] sm:$0xff] }
  0xf2   : > { %v2223_v39 = vsel %vm737_vm7, %v2203_v34, %v2183_v4 }
  0xf5   : > { %v1408_v60 = vpop.permute.xlu0 %1407  ;;  %v1448_v6 = vpop.permute.xlu1 %1447  ;;  %3323 = vmatmul.mubr.msk.bf16.gmra.mxu0 %vm858_vm8, %v2223_v39 }
  0xf6   : > { %v1470_v35 = vsel %vm275_vm6, %v3189_v61, %v1408_v60  ;;  %2425 = vmatprep.mubr.bf16.mxu0 %v3630_v36 }
  0xf7   : > { %v1488_v9 = vsel %vm737_vm7, %v1470_v35, %v1448_v6  ;;  %v767_v6 = vld [vmem:[#allocation2 + $0x68] sm:$0xff] }
  0xf8   : > { %3237 = vmatmul.mubr.msk.bf16.gmra.mxu1 %vm858_vm8, %v1488_v9 }
  0xf9   : > { %1706 = vmatprep.mubr.bf16.mxu1 %v3630_v36 }
  0xfb   : > { %v2185_v14 = vpop.permute.xlu1 %2184 }
  0xfc   : > { %v2145_v40 = vpop.permute.xlu0 %2144 }
  0xfd   : > { %v2206_v46 = vsel %vm275_vm6, %v3276_v1, %v2145_v40 }
  0xfe   : > { %v2225_v25 = vsel %vm737_vm7, %v2206_v46, %v2185_v14  ;;  %v769_v14 = vld [vmem:[#allocation2 + $0x78] sm:$0xff] }
  0xff   : > { %3324 = vmatmul.mubr.msk.bf16.gmra.mxu0 %vm858_vm8, %v2225_v25 }
 0x100   : > { %2435 = vmatprep.mubr.bf16.mxu0 %v3630_v36 }
 0x101   : > { %v1410_v61 = vpop.permute.xlu0 %1409  ;;  %v1450_v15 = vpop.permute.xlu1 %1449 }
 0x102   : > { %v1473_v29 = vsel %vm275_vm6, %v3190_v23, %v1410_v61 }
 0x103   : > { %v1490_v7 = vsel %vm737_vm7, %v1473_v29, %v1450_v15 }
 0x104   : > { %3238 = vmatmul.mubr.msk.bf16.gmra.mxu1 %vm858_vm8, %v1490_v7  ;;  %v771_v7 = vld [vmem:[#allocation2 + $0x88] sm:$0xff] }
 0x105   : > { %1716 = vmatprep.mubr.bf16.mxu1 %v3630_v36 }
 0x107   : > { %v2187_v13 = vpop.permute.xlu1 %2186 }
 0x108   : > { %v2147_v1 = vpop.permute.xlu0 %2146 }
 0x109   : > { %v2209_v53 = vsel %vm275_vm6, %v3277_v3, %v2147_v1 }
 0x10a   : > { %v2227_v41 = vsel %vm737_vm7, %v2209_v53, %v2187_v13 }
 0x10b   : > { %3325 = vmatmul.mubr.msk.bf16.gmra.mxu0 %vm858_vm8, %v2227_v41 }
 0x10c   : > { %2445 = vmatprep.mubr.bf16.mxu0 %v3630_v36 }
 0x10d   : > { %v1412_v49 = vpop.permute.xlu0 %1411  ;;  %v1452_v23 = vpop.permute.xlu1 %1451 }
 0x10e   : > { %v1476_v32 = vsel %vm275_vm6, %v3191_v16, %v1412_v49 }
 0x10f   : > { %v1492_v11 = vsel %vm737_vm7, %v1476_v32, %v1452_v23  ;;  %v773_v32 = vld [vmem:[#allocation2 + $0x98] sm:$0xff] }
 0x110   : > { %3239 = vmatmul.mubr.msk.bf16.gmra.mxu1 %vm858_vm8, %v1492_v11 }
 0x113   : > { %v2189_v3 = vpop.permute.xlu1 %2188 }
 0x116   : > { %v2149_v37 = vpop.permute.xlu0 %2148 }
 0x117   : > { %v2212_v50 = vsel %vm275_vm6, %v3278_v19, %v2149_v37  ;;  %v3493_v19 = vld [vmem:[%s4863_s3 + $0x10] sm:$0xff]   ;;  %v775_v37 = vld [vmem:[#allocation2 + $0xa8] sm:$0xff] }
 0x118   : > { %v2229_v55 = vsel %vm737_vm7, %v2212_v50, %v2189_v3  ;;  %2732 = vmatpush1.bf16.msra.mxu1 %v3493_v19 }
 0x119   : > { %3326 = vmatmul.mubr.msk.bf16.gmra.mxu0 %vm858_vm8, %v2229_v55  ;;  %v2191_v16 = vpop.permute.xlu1 %2190  ;;  %2733 = vmatprep.subr.bf16.mxu1 %v3630_v36 }
 0x11a   : > { %2455 = vmatprep.mubr.bf16.mxu0 %v3630_v36 }
 0x11c   : > { %v2151_v56 = vpop.permute.xlu0 %2150  ;;  %2734 = vmatpush1.bf16.msra.mxu1 %v3494_v17  ;;  %v777_v17 = vld [vmem:[#allocation2 + $0xb8] sm:$0xff] }
 0x11d   : > { %v2215_v33 = vsel %vm275_vm6, %v3279_v20, %v2151_v56  ;;  %2735 = vmatprep.subr.bf16.mxu1 %v3630_v36  ;;  %v3496_v20 = vld [vmem:[%s4863_s3 + $0x48] sm:$0xff]  }
 0x11e   : > { %v2231_v44 = vsel %vm737_vm7, %v2215_v33, %v2191_v16 }
 0x120   : > { %2736 = vmatpush1.bf16.msra.mxu1 %v3495_v26 }
 0x121   : > { %3327 = vmatmul.mubr.msk.bf16.gmra.mxu0 %vm858_vm8, %v2231_v44  ;;  %2749 = vmatprep.subr.bf16.mxu1 %v3630_v36 }
 0x124   : > { %2750 = vmatpush2.bf16.msra.mxu1 %v3496_v20 }
 0x125   : > { %2751 = vmatprep.subr.bf16.mxu1 %v3630_v36  ;;  %v759_v36 = vld [vmem:[#allocation2 + $0x28] sm:$0xff] }
 0x128   : > { %2752 = vmatpush2.bf16.msra.mxu1 %v3497_v45 }
 0x15d   : > { %v4524_v48 = vpop.f32.mrf.mxu0 }
 0x15f   : > { %v911_v52 = vpop.f32.mrf.mxu0 }
 0x160   : > { %v989_v8 = vadd.f32 %v911_v52, %v755_v51 }
 0x161   : > { %v4526_v54 = vpop.f32.mrf.mxu0 }
 0x162   : > { %1021 = vst.msk [vmem:[#allocation2 + $0x8] sm:$0xff] %vm275_vm6, %v989_v8 }
 0x163   : > { %v915_v12 = vpop.f32.mrf.mxu0 }
 0x164   : > { %v991_v42 = vadd.f32 %v915_v12, %v757_v24 }
 0x165   : > { %v4529_v47 = vpop.f32.mrf.mxu0 }
 0x166   : > { %1023 = vst.msk [vmem:[#allocation2 + $0x18] sm:$0xff] %vm275_vm6, %v991_v42  ;;  %v779_v42 = vld [vmem:[#allocation2 + $0xc8] sm:$0xff] }
 0x167   : > { %v921_v21 = vpop.f32.mrf.mxu0 }
 0x168   : > { %v993_v2 = vadd.f32 %v921_v21, %v759_v36 }
 0x169   : > { %v4532_v57 = vpop.f32.mrf.mxu0  ;;  %v1494_v25 = vld [vmem:[#allocation2 + $0x8] sm:$0xff] }
 0x16a   : > { %1025 = vst.msk [vmem:[#allocation2 + $0x28] sm:$0xff] %vm275_vm6, %v993_v2 }
 0x16b   : > { %v925_v28 = vpop.f32.mrf.mxu0 }
 0x16c   : > { %v995_v22 = vadd.f32 %v925_v28, %v761_v5  ;;  %v781_v28 = vld [vmem:[#allocation2 + $0xd8] sm:$0xff] }
 0x16d   : > { %v4535_v58 = vpop.f32.mrf.mxu0  ;;  %v1496_v53 = vld [vmem:[#allocation2 + $0x18] sm:$0xff] }
 0x16e   : > { %1027 = vst.msk [vmem:[#allocation2 + $0x38] sm:$0xff] %vm275_vm6, %v995_v22 }
 0x16f   : > { %v931_v38 = vpop.f32.mrf.mxu0 }
 0x170   : > { %v997_v0 = vadd.f32 %v931_v38, %v763_v59 }
 0x171   : > { %v4538_v4 = vpop.f32.mrf.mxu0  ;;  %v1498_v43 = vld [vmem:[#allocation2 + $0x28] sm:$0xff] }
 0x172   : > { %1029 = vst.msk [vmem:[#allocation2 + $0x48] sm:$0xff] %vm275_vm6, %v997_v0 }
 0x173   : > { %v935_v34 = vpop.f32.mrf.mxu0 }
 0x174   : > { %v999_v39 = vadd.f32 %v935_v34, %v765_v10 }
 0x175   : > { %v4541_v60 = vpop.f32.mrf.mxu0  ;;  %v1500_v51 = vld [vmem:[#allocation2 + $0x38] sm:$0xff] }
 0x176   : > { %1031 = vst.msk [vmem:[#allocation2 + $0x58] sm:$0xff] %vm275_vm6, %v999_v39 }
 0x177   : > { %v941_v35 = vpop.f32.mrf.mxu0 }
 0x178   : > { %v1001_v9 = vadd.f32 %v941_v35, %v767_v6  ;;  %v783_v35 = vld [vmem:[#allocation2 + $0xe8] sm:$0xff] }
 0x179   : > { %v4544_v63 = vpop.f32.mrf.mxu0  ;;  %v1502_v0 = vld [vmem:[#allocation2 + $0x48] sm:$0xff] }
 0x17a   : > { %1033 = vst.msk [vmem:[#allocation2 + $0x68] sm:$0xff] %vm275_vm6, %v1001_v9 }
 0x17b   : > { %v945_v46 = vpop.f32.mrf.mxu0 }
 0x17c   : > { %v4546_v40 = vpop.f32.mrf.mxu1  ;;  %v1003_v15 = vadd.f32 %v945_v46, %v769_v14 }
 0x17d   : > { %v4549_v29 = vpop.f32.mrf.mxu0 }
 0x17e   : > { %v1650_v61 = vpop.f32.mrf.mxu1  ;;  %1035 = vst.msk [vmem:[#allocation2 + $0x78] sm:$0xff] %vm275_vm6, %v1003_v15 }
 0x17f   : > { %v1728_v27 = vadd.f32 %v1650_v61, %v1494_v25  ;;  %v951_v1 = vpop.f32.mrf.mxu0  ;;  %v1504_v25 = vld [vmem:[#allocation2 + $0x58] sm:$0xff] }
 0x180   : > { %v4551_v13 = vpop.f32.mrf.mxu1  ;;  %v1005_v49 = vadd.f32 %v951_v1, %v771_v7  ;;  %v785_v1 = vld [vmem:[#allocation2 + $0xf8] sm:$0xff] }
 0x181   : > { %1760 = vst.msk [vmem:[#allocation2 + $0x8] sm:$0xff] %vm275_vm6, %v1728_v27  ;;  %v4555_v31 = vpop.f32.mrf.mxu0 }
 0x182   : > { %v1654_v41 = vpop.f32.mrf.mxu1  ;;  %1037 = vst.msk [vmem:[#allocation2 + $0x88] sm:$0xff] %vm275_vm6, %v1005_v49 }
 0x183   : > { %v1730_v23 = vadd.f32 %v1654_v41, %v1496_v53  ;;  %v955_v11 = vpop.f32.mrf.mxu0  ;;  %v988_v53 = vadd.f32 %v4524_v48, %v4332_v30 }
 0x184   : > { %v1007_v18 = vadd.f32 %v955_v11, %v773_v32 }
 0x185   : > { %1762 = vst.msk [vmem:[#allocation2 + $0x18] sm:$0xff] %vm275_vm6, %v1730_v23  ;;  %v959_v3 = vpop.f32.mrf.mxu0  ;;  %v1727_v23 = vadd.f32 %v4546_v40, %v988_v53 }
 0x186   : > { %1039 = vst.msk [vmem:[#allocation2 + $0x98] sm:$0xff] %vm275_vm6, %v1007_v18  ;;  %v4563_v55 = vadd.f32 %v959_v3, %v4332_v30  ;;  %v990_v18 = vadd.f32 %v4526_v54, %v4332_v30 }
 0x187   : > { %v961_v16 = vpop.f32.mrf.mxu0 }
 0x188   : > { %v4559_v50 = vpop.f32.mrf.mxu1  ;;  %v1009_v33 = vadd.f32 %v961_v16, %v775_v37  ;;  %v2233_v37 = vld [vmem:[#allocation2 + $0x8] sm:$0xff] }
 0x189   : > { %v963_v19 = vpop.f32.mrf.mxu0 }
 0x18a   : > { %v1660_v56 = vpop.f32.mrf.mxu1  ;;  %1041 = vst.msk [vmem:[#allocation2 + $0xa8] sm:$0xff] %vm275_vm6, %v1009_v33  ;;  %v4569_v20 = vadd.f32 %v963_v19, %v4332_v30 }
 0x18b   : > { %v1732_v44 = vadd.f32 %v1660_v56, %v1498_v43  ;;  %v965_v45 = vpop.f32.mrf.mxu0  ;;  %v1729_v43 = vadd.f32 %v4551_v13, %v990_v18  ;;  %v1506_v56 = vld [vmem:[#allocation2 + $0x68] sm:$0xff]  ;;  %v1508_v13 = vld [vmem:[#allocation2 + $0x78] sm:$0xff] }
 0x18c   : > { %v4565_v26 = vpop.f32.mrf.mxu1  ;;  %v1011_v8 = vadd.f32 %v965_v45, %v777_v17  ;;  %v992_v17 = vadd.f32 %v4529_v47, %v4332_v30 }
 0x18d   : > { %1764 = vst.msk [vmem:[#allocation2 + $0x28] sm:$0xff] %vm275_vm6, %v1732_v44  ;;  %v969_v12 = vpop.f32.mrf.mxu0 }
 0x18e   : > { %v1664_v52 = vpop.f32.mrf.mxu1  ;;  %1043 = vst.msk [vmem:[#allocation2 + $0xb8] sm:$0xff] %vm275_vm6, %v1011_v8  ;;  %v4574_v36 = vadd.f32 %v969_v12, %v4332_v30  ;;  %v1731_v8 = vadd.f32 %v4559_v50, %v992_v17 }
 0x18f   : > { %v1734_v24 = vadd.f32 %v1664_v52, %v1500_v51  ;;  %v971_v21 = vpop.f32.mrf.mxu0  ;;  %v2235_v51 = vld [vmem:[#allocation2 + $0x18] sm:$0xff] }
 0x190   : > { %v1013_v2 = vadd.f32 %v971_v21, %v779_v42 }
 0x191   : > { %1766 = vst.msk [vmem:[#allocation2 + $0x38] sm:$0xff] %vm275_vm6, %v1734_v24  ;;  %v973_v5 = vpop.f32.mrf.mxu0 }
 0x192   : > { %1045 = vst.msk [vmem:[#allocation2 + $0xc8] sm:$0xff] %vm275_vm6, %v1013_v2  ;;  %v4581_v59 = vadd.f32 %v973_v5, %v4332_v30  ;;  %v994_v2 = vadd.f32 %v4532_v57, %v4332_v30 }
 0x193   : > { %v975_v38 = vpop.f32.mrf.mxu0 }
 0x194   : > { %v4577_v22 = vpop.f32.mrf.mxu1  ;;  %v1015_v34 = vadd.f32 %v975_v38, %v781_v28  ;;  %v2237_v5 = vld [vmem:[#allocation2 + $0x28] sm:$0xff]  ;;  %v1733_v38 = vadd.f32 %v4565_v26, %v994_v2 }
 0x195   : > { %v979_v6 = vpop.f32.mrf.mxu0 }
 0x196   : > { %v1670_v10 = vpop.f32.mrf.mxu1  ;;  %1047 = vst.msk [vmem:[#allocation2 + $0xd8] sm:$0xff] %vm275_vm6, %v1015_v34  ;;  %v4587_v14 = vadd.f32 %v979_v6, %v4332_v30 }
 0x197   : > { %v1736_v39 = vadd.f32 %v1670_v10, %v1502_v0  ;;  %v981_v46 = vpop.f32.mrf.mxu0  ;;  %v996_v10 = vadd.f32 %v4535_v58, %v4332_v30  ;;  %v998_v58 = vadd.f32 %v4538_v4, %v4332_v30 }
 0x198   : > { %v4583_v9 = vpop.f32.mrf.mxu1  ;;  %v1017_v15 = vadd.f32 %v981_v46, %v783_v35 }
 0x199   : > { %1768 = vst.msk [vmem:[#allocation2 + $0x48] sm:$0xff] %vm275_vm6, %v1736_v39  ;;  %v983_v7 = vpop.f32.mrf.mxu0  ;;  %v2239_v39 = vld [vmem:[#allocation2 + $0x38] sm:$0xff]  ;;  %v1735_v46 = vadd.f32 %v4577_v22, %v996_v10 }
 0x19a   : > { %v1674_v61 = vpop.f32.mrf.mxu1  ;;  %1049 = vst.msk [vmem:[#allocation2 + $0xe8] sm:$0xff] %vm275_vm6, %v1017_v15  ;;  %v4594_v41 = vadd.f32 %v983_v7, %v4332_v30 }
 0x19b   : > { %v1738_v27 = vadd.f32 %v1674_v61, %v1504_v25  ;;  %v985_v49 = vpop.f32.mrf.mxu0  ;;  %v1510_v25 = vld [vmem:[#allocation2 + $0x88] sm:$0xff] }
 0x19c   : > { %v1019_v32 = vadd.f32 %v985_v49, %v785_v1 }
 0x19d   : > { %1770 = vst.msk [vmem:[#allocation2 + $0x58] sm:$0xff] %vm275_vm6, %v1738_v27  ;;  %v2387_v11 = vpop.f32.mrf.mxu0 }
 0x19e   : > { %1051 = vst.msk [vmem:[#allocation2 + $0xf8] sm:$0xff] %vm275_vm6, %v1019_v32  ;;  %v4603_v48 = vadd.f32 %v2387_v11, %v1727_v23 }
 0x19f   : > { %v2389_v16 = vpop.f32.mrf.mxu0 }
 0x1a0   : > { %v4600_v3 = vpop.f32.mrf.mxu1  ;;  %v2467_v44 = vadd.f32 %v2389_v16, %v2233_v37  ;;  %v2241_v22 = vld [vmem:[#allocation2 + $0x48] sm:$0xff]  ;;  %v2562_v18 = vmax.f32 %v4603_v48, 0.0  ;;  %v1737_v37 = vadd.f32 %v4583_v9, %v998_v58  ;;  %v1512_v16 = vld [vmem:[#allocation2 + $0x98] sm:$0xff] }
 0x1a1   : > { %v2391_v40 = vpop.f32.mrf.mxu0 }
 0x1a2   : > { %v1680_v33 = vpop.f32.mrf.mxu1  ;;  %2499 = vst.msk [vmem:[#allocation2 + $0x8] sm:$0xff] %vm275_vm6, %v2467_v44  ;;  %v2468_v54 = vadd.f32 %v2391_v40, %v1729_v43  ;;  %v1000_v40 = vadd.f32 %v4541_v60, %v4332_v30  ;;  %v1002_v60 = vadd.f32 %v4544_v63, %v4332_v30 }
 0x1a3   : > { %v1740_v19 = vadd.f32 %v1680_v33, %v1506_v56  ;;  %v2393_v52 = vpop.f32.mrf.mxu0 }
 0x1a4   : > { %v4608_v45 = vpop.f32.mrf.mxu1  ;;  %v2469_v12 = vadd.f32 %v2393_v52, %v2235_v51  ;;  %v2564_v1 = vmax.f32 %v2468_v54, 0.0  ;;  %v2243_v48 = vld [vmem:[#allocation2 + $0x58] sm:$0xff]  ;;  %v1739_v51 = vadd.f32 %v4600_v3, %v1000_v40 }
 0x1a5   : > { %1772 = vst.msk [vmem:[#allocation2 + $0x68] sm:$0xff] %vm275_vm6, %v1740_v19  ;;  %v2397_v21 = vpop.f32.mrf.mxu0  ;;  %v1741_v3 = vadd.f32 %v4608_v45, %v1002_v60 }
 0x1a6   : > { %v1684_v24 = vpop.f32.mrf.mxu1  ;;  %2501 = vst.msk [vmem:[#allocation2 + $0x18] sm:$0xff] %vm275_vm6, %v2469_v12  ;;  %v4616_v47 = vadd.f32 %v2397_v21, %v1731_v8  ;;  %v2594_v19 = vpack.c.bf16 %v2564_v1, %v2562_v18 }
 0x1a7   : > { %v1742_v42 = vadd.f32 %v1684_v24, %v1508_v13  ;;  %v2399_v28 = vpop.f32.mrf.mxu0 }
 0x1a8   : > { %v2471_v0 = vadd.f32 %v2399_v28, %v2237_v5 }
 0x1a9   : > { %1774 = vst.msk [vmem:[#allocation2 + $0x78] sm:$0xff] %vm275_vm6, %v1742_v42  ;;  %v2401_v50 = vpop.f32.mrf.mxu0  ;;  %v2531_v35 = vld [vmem:[#allocation2 + $0x8] sm:$0xff] }
 0x1aa   : > { %2503 = vst.msk [vmem:[#allocation2 + $0x28] sm:$0xff] %vm275_vm6, %v2471_v0  ;;  %v2472_v57 = vadd.f32 %v2401_v50, %v1733_v38  ;;  %v2563_v23 = vmax.f32 %v2531_v35, 0.0  ;;  %v2566_v38 = vmax.f32 %v4616_v47, 0.0  ;;  %v1514_v0 = vld [vmem:[#allocation2 + $0xa8] sm:$0xff]  ;;  %v1004_v35 = vadd.f32 %v4549_v29, %v4332_v30 }
 0x1ab   : > { %v2403_v6 = vpop.f32.mrf.mxu0 }
 0x1ac   : > { %v4622_v34 = vpop.f32.mrf.mxu1  ;;  %v2473_v15 = vadd.f32 %v2403_v6, %v2239_v39  ;;  %v2568_v24 = vmax.f32 %v2472_v57, 0.0  ;;  %v2245_v5 = vld [vmem:[#allocation2 + $0x68] sm:$0xff] }
 0x1ad   : > { %v2407_v26 = vpop.f32.mrf.mxu0  ;;  %v2533_v7 = vld [vmem:[#allocation2 + $0x18] sm:$0xff] }
 0x1ae   : > { %v1690_v61 = vpop.f32.mrf.mxu1  ;;  %2505 = vst.msk [vmem:[#allocation2 + $0x38] sm:$0xff] %vm275_vm6, %v2473_v15  ;;  %v4631_v49 = vadd.f32 %v2407_v26, %v1735_v46  ;;  %v2565_v32 = vmax.f32 %v2533_v7, 0.0  ;;  %v2596_v6 = vpack.c.bf16 %v2568_v24, %v2566_v38  ;;  %v1743_v15 = vadd.f32 %v4622_v34, %v1004_v35 }
 0x1af   : > { %v1744_v27 = vadd.f32 %v1690_v61, %v1510_v25  ;;  %v2409_v11 = vpop.f32.mrf.mxu0 }
 0x1b0   : > { %v4628_v53 = vpop.f32.mrf.mxu1  ;;  %v2475_v56 = vadd.f32 %v2409_v11, %v2241_v22  ;;  %v2595_v4 = vpack.c.bf16 %v2565_v32, %v2563_v23  ;;  %v2247_v45 = vld [vmem:[#allocation2 + $0x78] sm:$0xff]  ;;  %v1006_v32 = vadd.f32 %v4555_v31, %v4332_v30 }
 0x1b1   : > { %1776 = vst.msk [vmem:[#allocation2 + $0x88] sm:$0xff] %vm275_vm6, %v1744_v27  ;;  %v2411_v44 = vpop.f32.mrf.mxu0  ;;  %v2535_v9 = vld [vmem:[#allocation2 + $0x28] sm:$0xff]  ;;  %v1516_v27 = vld [vmem:[#allocation2 + $0xb8] sm:$0xff] }
 0x1b2   : > { %v1694_v43 = vpop.f32.mrf.mxu1  ;;  %2507 = vst.msk [vmem:[#allocation2 + $0x48] sm:$0xff] %vm275_vm6, %v2475_v56  ;;  %v2476_v17 = vadd.f32 %v2411_v44, %v1737_v37  ;;  %3339 = vmatprep.mubr.msk.bf16.mxu1 %vm275_vm6, %v2595_v4  ;;  %v2567_v21 = vmax.f32 %v2535_v9, 0.0 }
 0x1b3   : > { %v1746_v33 = vadd.f32 %v1694_v43, %v1512_v16  ;;  %v2413_v54 = vpop.f32.mrf.mxu0  ;;  %2754 = vmatmul.mubr.bf16.vlgmr.msra.gmra.mxu1 %v2594_v19  ;;  %v2570_v16 = vmax.f32 %v4631_v49, 0.0  ;;  %v1745_v43 = vadd.f32 %v4628_v53, %v1006_v32 }
 0x1b4   : > { %v2477_v52 = vadd.f32 %v2413_v54, %v2243_v48  ;;  %v2572_v23 = vmax.f32 %v2476_v17, 0.0  ;;  %v1518_v48 = vld [vmem:[#allocation2 + $0xc8] sm:$0xff] }
 0x1b5   : > { %1778 = vst.msk [vmem:[#allocation2 + $0x98] sm:$0xff] %vm275_vm6, %v1746_v33  ;;  %v2417_v8 = vpop.f32.mrf.mxu0  ;;  %v2537_v13 = vld [vmem:[#allocation2 + $0x38] sm:$0xff] }
 0x1b6   : > { %2509 = vst.msk [vmem:[#allocation2 + $0x58] sm:$0xff] %vm275_vm6, %v2477_v52  ;;  %v4647_v42 = vadd.f32 %v2417_v8, %v1739_v51  ;;  %v2569_v2 = vmax.f32 %v2537_v13, 0.0  ;;  %v2598_v44 = vpack.c.bf16 %v2572_v23, %v2570_v16 }
 0x1b7   : > { %v2419_v28 = vpop.f32.mrf.mxu0 }
 0x1b8   : > { %v4644_v12 = vpop.f32.mrf.mxu1  ;;  %v2479_v10 = vadd.f32 %v2419_v28, %v2245_v5  ;;  %v2597_v57 = vpack.c.bf16 %v2569_v2, %v2567_v21  ;;  %v2249_v37 = vld [vmem:[#allocation2 + $0x88] sm:$0xff]  ;;  %v2574_v24 = vmax.f32 %v4647_v42, 0.0  ;;  %v1520_v21 = vld [vmem:[#allocation2 + $0xd8] sm:$0xff] }
 0x1b9   : > { %v2421_v63 = vpop.f32.mrf.mxu0  ;;  %v2539_v61 = vld [vmem:[#allocation2 + $0x48] sm:$0xff]  ;;  %v1747_v60 = vadd.f32 %v4644_v12, %v4563_v55 }
 0x1ba   : > { %v1700_v50 = vpop.f32.mrf.mxu1  ;;  %2511 = vst.msk [vmem:[#allocation2 + $0x68] sm:$0xff] %vm275_vm6, %v2479_v10  ;;  %v2480_v25 = vadd.f32 %v2421_v63, %v1741_v3  ;;  %3340 = vmatprep.mubr.msk.bf16.mxu1 %vm275_vm6, %v2597_v57  ;;  %v2571_v11 = vmax.f32 %v2539_v61, 0.0 }
 0x1bb   : > { %v1748_v39 = vadd.f32 %v1700_v50, %v1514_v0  ;;  %v2423_v47 = vpop.f32.mrf.mxu0  ;;  %2762 = vmatmul.mubr.bf16.gmra.mxu1 %v2596_v6 }
 0x1bc   : > { %v4653_v46 = vpop.f32.mrf.mxu1  ;;  %v2481_v7 = vadd.f32 %v2423_v47, %v2247_v45  ;;  %v2251_v31 = vld [vmem:[#allocation2 + $0x98] sm:$0xff]  ;;  %v2576_v51 = vmax.f32 %v2480_v25, 0.0 }
 0x1bd   : > { %1780 = vst.msk [vmem:[#allocation2 + $0xa8] sm:$0xff] %vm275_vm6, %v1748_v39  ;;  %v2541_v58 = vld [vmem:[#allocation2 + $0x58] sm:$0xff]  ;;  %v1749_v42 = vadd.f32 %v4653_v46, %v4569_v20 }
 0x1be   : > { %v1704_v26 = vpop.f32.mrf.mxu1  ;;  %2513 = vst.msk [vmem:[#allocation2 + $0x78] sm:$0xff] %vm275_vm6, %v2481_v7  ;;  %v2573_v18 = vmax.f32 %v2541_v58, 0.0  ;;  %v2600_v3 = vpack.c.bf16 %v2576_v51, %v2574_v24 }
 0x1bf   : > { %v1750_v1 = vadd.f32 %v1704_v26, %v1516_v27  ;;  %v2427_v29 = vpop.f32.mrf.mxu0  ;;  %v1522_v27 = vld [vmem:[#allocation2 + $0xe8] sm:$0xff] }
 0x1c0   : > { %v4662_v22 = vadd.f32 %v2427_v29, %v1743_v15  ;;  %v2599_v4 = vpack.c.bf16 %v2573_v18, %v2571_v11  ;;  %v1524_v11 = vld [vmem:[#allocation2 + $0xf8] sm:$0xff] }
 0x1c1   : > { %1782 = vst.msk [vmem:[#allocation2 + $0xb8] sm:$0xff] %vm275_vm6, %v1750_v1  ;;  %v2429_v34 = vpop.f32.mrf.mxu0  ;;  %v2543_v17 = vld [vmem:[#allocation2 + $0x68] sm:$0xff] }
 0x1c2   : > { %v2483_v56 = vadd.f32 %v2429_v34, %v2249_v37  ;;  %3341 = vmatprep.mubr.msk.bf16.mxu1 %vm275_vm6, %v2599_v4  ;;  %v2575_v8 = vmax.f32 %v2543_v17, 0.0  ;;  %v2578_v15 = vmax.f32 %v4662_v22, 0.0 }
 0x1c3   : > { %v2431_v33 = vpop.f32.mrf.mxu0  ;;  %2770 = vmatmul.mubr.bf16.gmra.mxu1 %v2598_v44 }
 0x1c4   : > { %v4667_v19 = vpop.f32.mrf.mxu1  ;;  %2515 = vst.msk [vmem:[#allocation2 + $0x88] sm:$0xff] %vm275_vm6, %v2483_v56  ;;  %v2484_v30 = vadd.f32 %v2431_v33, %v1745_v43  ;;  %v2253_v50 = vld [vmem:[#allocation2 + $0xa8] sm:$0xff] }
 0x1c5   : > { %v2433_v40 = vpop.f32.mrf.mxu0  ;;  %v2545_v53 = vld [vmem:[#allocation2 + $0x78] sm:$0xff]  ;;  %v1751_v37 = vadd.f32 %v4667_v19, %v4574_v36 }
 0x1c6   : > { %v1710_v54 = vpop.f32.mrf.mxu1  ;;  %v2485_v49 = vadd.f32 %v2433_v40, %v2251_v31  ;;  %v2577_v13 = vmax.f32 %v2545_v53, 0.0  ;;  %v2580_v63 = vmax.f32 %v2484_v30, 0.0 }
 0x1c7   : > { %v1752_v9 = vadd.f32 %v1710_v54, %v1518_v48 }
 0x1c8   : > { %v1712_v52 = vpop.f32.mrf.mxu1  ;;  %2517 = vst.msk [vmem:[#allocation2 + $0x98] sm:$0xff] %vm275_vm6, %v2485_v49  ;;  %v2601_v5 = vpack.c.bf16 %v2577_v13, %v2575_v8  ;;  %v2255_v47 = vld [vmem:[#allocation2 + $0xb8] sm:$0xff]  ;;  %v2602_v58 = vpack.c.bf16 %v2580_v63, %v2578_v15 }
 0x1c9   : > { %1784 = vst.msk [vmem:[#allocation2 + $0xc8] sm:$0xff] %vm275_vm6, %v1752_v9  ;;  %v1753_v31 = vadd.f32 %v1712_v52, %v4581_v59 }
 0x1ca   : > { %v1714_v2 = vpop.f32.mrf.mxu1  ;;  %3342 = vmatprep.mubr.msk.bf16.mxu1 %vm275_vm6, %v2601_v5 }
 0x1cb   : > { %v1754_v28 = vadd.f32 %v1714_v2, %v1520_v21  ;;  %v2437_v38 = vpop.f32.mrf.mxu0  ;;  %2778 = vmatmul.mubr.bf16.gmra.mxu1 %v2600_v3  ;;  %v2547_v57 = vld [vmem:[#allocation2 + $0x88] sm:$0xff] }
 0x1cc   : > { %v2486_v0 = vadd.f32 %v2437_v38, %v1747_v60  ;;  %v2579_v25 = vmax.f32 %v2547_v57, 0.0 }
 0x1cd   : > { %1786 = vst.msk [vmem:[#allocation2 + $0xd8] sm:$0xff] %vm275_vm6, %v1754_v28  ;;  %v2439_v10 = vpop.f32.mrf.mxu0 }
 0x1ce   : > { %v2487_v39 = vadd.f32 %v2439_v10, %v2253_v50  ;;  %v2582_v29 = vmax.f32 %v2486_v0, 0.0 }
 0x1cf   : > { %v2441_v55 = vpop.f32.mrf.mxu0  ;;  %v2549_v12 = vld [vmem:[#allocation2 + $0x98] sm:$0xff] }
 0x1d0   : > { %v1718_v6 = vpop.f32.mrf.mxu1  ;;  %2519 = vst.msk [vmem:[#allocation2 + $0xa8] sm:$0xff] %vm275_vm6, %v2487_v39  ;;  %v2488_v35 = vadd.f32 %v2441_v55, %v1749_v42  ;;  %v2581_v45 = vmax.f32 %v2549_v12, 0.0  ;;  %v2257_v4 = vld [vmem:[#allocation2 + $0xc8] sm:$0xff] }
 0x1d1   : > { %v2443_v61 = vpop.f32.mrf.mxu0  ;;  %v1755_v19 = vadd.f32 %v1718_v6, %v4587_v14 }
 0x1d2   : > { %v1720_v26 = vpop.f32.mrf.mxu1  ;;  %v2489_v7 = vadd.f32 %v2443_v61, %v2255_v47  ;;  %v2603_v1 = vpack.c.bf16 %v2581_v45, %v2579_v25  ;;  %v2584_v20 = vmax.f32 %v2488_v35, 0.0 }
 0x1d3   : > { %v1756_v46 = vadd.f32 %v1720_v26, %v1522_v27 }
 0x1d4   : > { %v1722_v23 = vpop.f32.mrf.mxu1  ;;  %2521 = vst.msk [vmem:[#allocation2 + $0xb8] sm:$0xff] %vm275_vm6, %v2489_v7  ;;  %3343 = vmatprep.mubr.msk.bf16.mxu1 %vm275_vm6, %v2603_v1  ;;  %v2604_v32 = vpack.c.bf16 %v2584_v20, %v2582_v29  ;;  %v2259_v49 = vld [vmem:[#allocation2 + $0xd8] sm:$0xff] }
 0x1d5   : > { %1788 = vst.msk [vmem:[#allocation2 + $0xe8] sm:$0xff] %vm275_vm6, %v1756_v46  ;;  %2786 = vmatmul.mubr.bf16.gmra.mxu1 %v2602_v58  ;;  %v1757_v60 = vadd.f32 %v1722_v23, %v4594_v41 }
 0x1d6   : > { %v1724_v18 = vpop.f32.mrf.mxu1 }
 0x1d7   : > { %v1758_v22 = vadd.f32 %v1724_v18, %v1524_v11  ;;  %v2551_v34 = vld [vmem:[#allocation2 + $0xa8] sm:$0xff]  ;;  %v4717_v18 = vld [vmem:[%s4864_s4] ss:$0 sm:$0xff] }
 0x1d8   : > { %v2583_v44 = vmax.f32 %v2551_v34, 0.0 }
 0x1d9   : > { %1790 = vst.msk [vmem:[#allocation2 + $0xf8] sm:$0xff] %vm275_vm6, %v1758_v22  ;;  %v2447_v16 = vpop.f32.mrf.mxu0 }
 0x1da   : > { %v2490_v43 = vadd.f32 %v2447_v16, %v1751_v37 }
 0x1db   : > { %v2553_v56 = vld [vmem:[#allocation2 + $0xb8] sm:$0xff]  ;;  %v2449_v33 = vpop.f32.mrf.mxu0 }
 0x1dc   : > { %v2585_v30 = vmax.f32 %v2553_v56, 0.0  ;;  %v2491_v40 = vadd.f32 %v2449_v33, %v2257_v4  ;;  %v2586_v53 = vmax.f32 %v2490_v43, 0.0  ;;  %v2261_v13 = vld [vmem:[#allocation2 + $0xe8] sm:$0xff] }
 0x1dd   : > { %v2451_v17 = vpop.f32.mrf.mxu0 }
 0x1de   : > { %v2605_v48 = vpack.c.bf16 %v2585_v30, %v2583_v44  ;;  %2523 = vst.msk [vmem:[#allocation2 + $0xc8] sm:$0xff] %vm275_vm6, %v2491_v40  ;;  %v2492_v54 = vadd.f32 %v2451_v17, %v1753_v31 }
 0x1df   : > { %v2453_v36 = vpop.f32.mrf.mxu0 }
 0x1e0   : > { %3344 = vmatprep.mubr.msk.bf16.mxu1 %vm275_vm6, %v2605_v48  ;;  %v2493_v9 = vadd.f32 %v2453_v36, %v2259_v49  ;;  %v2588_v51 = vmax.f32 %v2492_v54, 0.0  ;;  %v2263_v28 = vld [vmem:[#allocation2 + $0xf8] sm:$0xff] }
 0x1e1   : > { %2794 = vmatmul.mubr.bf16.gmra.mxu1 %v2604_v32  ;;  %v2457_v8 = vpop.f32.mrf.mxu0 }
 0x1e2   : > { %2525 = vst.msk [vmem:[#allocation2 + $0xd8] sm:$0xff] %vm275_vm6, %v2493_v9  ;;  %v2494_v59 = vadd.f32 %v2457_v8, %v1755_v19  ;;  %v2606_v52 = vpack.c.bf16 %v2588_v51, %v2586_v53 }
 0x1e3   : > { %v2459_v24 = vpop.f32.mrf.mxu0 }
 0x1e4   : > { %v2495_v21 = vadd.f32 %v2459_v24, %v2261_v13  ;;  %v2590_v0 = vmax.f32 %v2494_v59, 0.0 }
 0x1e5   : > { %v2461_v2 = vpop.f32.mrf.mxu0  ;;  %v2555_v38 = vld [vmem:[#allocation2 + $0xc8] sm:$0xff] }
 0x1e6   : > { %2527 = vst.msk [vmem:[#allocation2 + $0xe8] sm:$0xff] %vm275_vm6, %v2495_v21  ;;  %v2496_v5 = vadd.f32 %v2461_v2, %v1757_v60  ;;  %v2587_v57 = vmax.f32 %v2555_v38, 0.0 }
 0x1e7   : > { %v2463_v14 = vpop.f32.mrf.mxu0 }
 0x1e8   : > { %v2497_v3 = vadd.f32 %v2463_v14, %v2263_v28  ;;  %v2592_v50 = vmax.f32 %v2496_v5, 0.0  ;;  %v4735_v14 = vand.u32 127, %v264_v62 }
 0x1e9   : > { %v2557_v10 = vld [vmem:[#allocation2 + $0xd8] sm:$0xff] }
 0x1ea   : > { %2529 = vst.msk [vmem:[#allocation2 + $0xf8] sm:$0xff] %vm275_vm6, %v2497_v3  ;;  %v2589_v42 = vmax.f32 %v2557_v10, 0.0  ;;  %v2608_v39 = vpack.c.bf16 %v2592_v50, %v2590_v0  ;;  %vm2948_vm9 = vcmp.lt.s32.totalorder %v4735_v14, 3 }
 0x1ec   : > { %v2607_v55 = vpack.c.bf16 %v2589_v42, %v2587_v57 }
 0x1ed   : > { %v2559_v41 = vld [vmem:[#allocation2 + $0xe8] sm:$0xff] }
 0x1ee   : > { %3345 = vmatprep.mubr.msk.bf16.mxu1 %vm275_vm6, %v2607_v55  ;;  %v2591_v63 = vmax.f32 %v2559_v41, 0.0 }
 0x1ef   : > { %2802 = vmatmul.mubr.bf16.gmra.mxu1 %v2606_v52 }
 0x1f1   : > { %v2561_v12 = vld [vmem:[#allocation2 + $0xf8] sm:$0xff] }
 0x1f2   : > { %v2593_v6 = vmax.f32 %v2561_v12, 0.0 }
 0x1f4   : > { %v2609_v35 = vpack.c.bf16 %v2593_v6, %v2591_v63 }
 0x1f6   : > { %3346 = vmatprep.mubr.msk.bf16.mxu1 %vm275_vm6, %v2609_v35 }
 0x1f7   : > { %2810 = vmatmul.mubr.bf16.gmra.mxu1 %v2608_v39 }
 0x273   : > { %v4698_v25 = vpop.f32.mrf.mxu1 }
 0x275   : > { %v2757_v45 = vpop.f32.mrf.mxu1 }
 0x277   : > { %v4700_v47 = vpop.f32.mrf.mxu1 }
 0x279   : > { %v2760_v61 = vpop.f32.mrf.mxu1 }
 0x27b   : > { %v4702_v15 = vpop.f32.mrf.mxu1 }
 0x27d   : > { %v2765_v27 = vpop.f32.mrf.mxu1 }
 0x27f   : > { %v4704_v26 = vpop.f32.mrf.mxu1 }
 0x281   : > { %v2768_v7 = vpop.f32.mrf.mxu1 }
 0x283   : > { %v4706_v1 = vpop.f32.mrf.mxu1 }
 0x285   : > { %v2773_v29 = vpop.f32.mrf.mxu1 }
 0x287   : > { %v4708_v20 = vpop.f32.mrf.mxu1 }
 0x289   : > { %v2776_v46 = vpop.f32.mrf.mxu1 }
 0x28b   : > { %v4710_v58 = vpop.f32.mrf.mxu1 }
 0x28d   : > { %v2781_v23 = vpop.f32.mrf.mxu1 }
 0x28f   : > { %v4712_v32 = vpop.f32.mrf.mxu1 }
 0x291   : > { %v2784_v11 = vpop.f32.mrf.mxu1 }
 0x295   : > { %v2787_v22 = vpop.f32.mrf.mxu1 }
 0x296   : > { %v2788_v37 = vadd.f32 %v4717_v18, %v2787_v22 }
 0x297   : > { %v2789_v34 = vpop.f32.mrf.mxu1 }
 0x298   : > { %v3355_v16 = vmul.f32 -1.442695, %v2788_v37 }
 0x299   : > { %v2790_v43 = vpop.f32.mrf.mxu1 }
 0x29a   : > { %3498 = vpow2.f32 %v3355_v16  ;;  %v2791_v56 = vadd.f32 %v4717_v18, %v2790_v43 }
 0x29b   : > { %v2792_v4 = vpop.f32.mrf.mxu1 }
 0x29c   : > { %v3356_v33 = vmul.f32 -1.442695, %v2791_v56 }
 0x29e   : > { %3500 = vpow2.f32 %v3356_v33 }
 0x2a1   : > { %v2795_v44 = vpop.f32.mrf.mxu1 }
 0x2a2   : > { %v4722_v30 = vadd.f32 %v4717_v18, %v2795_v44 }
 0x2a3   : > { %v2797_v31 = vpop.f32.mrf.mxu1 }
 0x2a4   : > { %v3357_v40 = vmul.f32 -1.442695, %v4722_v30 }
 0x2a5   : > { %v2798_v17 = vpop.f32.mrf.mxu1 }
 0x2a6   : > { %3502 = vpow2.f32 %v3357_v40  ;;  %v4726_v48 = vadd.f32 %v4717_v18, %v2798_v17 }
 0x2a7   : > { %v3499_v54 = vpop.eup %3498  ;;  %v2800_v49 = vpop.f32.mrf.mxu1 }
 0x2a8   : > { %v2876_v36 = vadd.f32 1.0, %v3499_v54  ;;  %v3358_v19 = vmul.f32 -1.442695, %v4726_v48 }
 0x2aa   : > { %3504 = vrcp.f32 %v2876_v36 }
 0x2ab   : > { %v3501_v9 = vpop.eup %3500  ;;  %3506 = vpow2.f32 %v3358_v19 }
 0x2ac   : > { %v2877_v53 = vadd.f32 1.0, %v3501_v9 }
 0x2ae   : > { %3508 = vrcp.f32 %v2877_v53 }
 0x2af   : > { %v2803_v51 = vpop.f32.mrf.mxu1 }
 0x2b0   : > { %v4730_v8 = vadd.f32 %v4717_v18, %v2803_v51 }
 0x2b1   : > { %v2805_v59 = vpop.f32.mrf.mxu1 }
 0x2b2   : > { %v3359_v13 = vmul.f32 -1.442695, %v4730_v8 }
 0x2b3   : > { %v3503_v52 = vpop.eup %3502  ;;  %v2806_v60 = vpop.f32.mrf.mxu1 }
 0x2b4   : > { %v2878_v24 = vadd.f32 1.0, %v3503_v52  ;;  %3510 = vpow2.f32 %v3359_v13  ;;  %v2807_v21 = vadd.f32 %v4717_v18, %v2806_v60  ;;  %v2756_v60 = vadd.f32 %v4717_v18, %v4698_v25 }
 0x2b5   : > { %v2808_v2 = vpop.f32.mrf.mxu1 }
 0x2b6   : > { %3512 = vrcp.f32 %v2878_v24  ;;  %v3360_v28 = vmul.f32 -1.442695, %v2807_v21  ;;  %v2759_v2 = vadd.f32 %v4717_v18, %v4700_v47  ;;  %v4783_v47 = vadd.f32 %v4717_v18, %v4706_v1 }
 0x2b7   : > { %v3505_v5 = vpop.eup %3504  ;;  %v2811_v3 = vpop.f32.mrf.mxu1 }
 0x2b8   : > { %v3507_v38 = vpop.eup %3506  ;;  %v2924_v0 = vmax.f32 %v3505_v5, 0.0001  ;;  %3514 = vpow2.f32 %v3360_v28  ;;  %v2812_v10 = vadd.f32 %v4717_v18, %v2811_v3  ;;  %v3348_v5 = vmul.f32 -1.442695, %v2759_v2 }
 0x2b9   : > { %v2879_v50 = vadd.f32 1.0, %v3507_v38  ;;  %v2813_v57 = vpop.f32.mrf.mxu1  ;;  %v4773_v28 = vadd.f32 %v4717_v18, %v4702_v15  ;;  %v4778_v3 = vadd.f32 %v4717_v18, %v4704_v26 }
 0x2ba   : > { %v2940_v42 = vmin.f32 %v2924_v0, 0.9999  ;;  %v3361_v55 = vmul.f32 -1.442695, %v2812_v10  ;;  %v3351_v57 = vmul.f32 -1.442695, %v4783_v47 }
 0x2bb   : > { %v3509_v39 = vpop.eup %3508  ;;  %3516 = vrcp.f32 %v2879_v50  ;;  %v2814_v41 = vpop.f32.mrf.mxu1  ;;  %v3349_v38 = vmul.f32 -1.442695, %v4773_v28  ;;  %v3350_v25 = vmul.f32 -1.442695, %v4778_v3 }
 0x2bc   : > { %v2957_v12 = vsel %vm2948_vm9, %v2940_v42, %v2788_v37  ;;  %v2925_v62 = vmax.f32 %v3509_v39, 0.0001  ;;  %3518 = vpow2.f32 %v3361_v55  ;;  %v2815_v63 = vadd.f32 %v4717_v18, %v2814_v41 }
 0x2bd   : > { %2973 = vrot.lane.b32.xlu0 %v2957_v12, %s3629_s7  ;;  %v2816_v6 = vpop.f32.mrf.mxu1  ;;  %v4788_v42 = vadd.f32 %v4717_v18, %v4708_v20  ;;  %v4793_v55 = vadd.f32 %v4717_v18, %v4710_v58 }
 0x2be   : > { %v2941_v35 = vmin.f32 %v2925_v62, 0.9999  ;;  %v3362_v45 = vmul.f32 -1.442695, %v2815_v63  ;;  %v4798_v62 = vadd.f32 %v4717_v18, %v4712_v32 }
 0x2bf   : > { %v3352_v39 = vmul.f32 -1.442695, %v4788_v42  ;;  %v3353_v12 = vmul.f32 -1.442695, %v4793_v55 }
 0x2c0   : > { %v2958_v61 = vsel %vm2948_vm9, %v2941_v35, %v2791_v56  ;;  %3520 = vpow2.f32 %v3362_v45  ;;  %v3354_v6 = vmul.f32 -1.442695, %v4798_v62 }
 0x2c1   : > { %2975 = vrot.lane.b32.xlu1 %v2958_v61, %s3629_s7  ;;  %v3511_v27 = vpop.eup %3510 }
 0x2c2   : > { %v2880_v29 = vadd.f32 1.0, %v3511_v27 }
 0x2c3   : > { %v3513_v7 = vpop.eup %3512 }
 0x2c4   : > { %v2926_v46 = vmax.f32 %v3513_v7, 0.0001  ;;  %3522 = vrcp.f32 %v2880_v29 }
 0x2c5   : > { %v3515_v23 = vpop.eup %3514 }
 0x2c6   : > { %v2942_v11 = vmin.f32 %v2926_v46, 0.9999  ;;  %v2881_v22 = vadd.f32 1.0, %v3515_v23 }
 0x2c8   : > { %v3517_v37 = vpop.eup %3516  ;;  %v2959_v34 = vsel %vm2948_vm9, %v2942_v11, %v4722_v30  ;;  %3524 = vrcp.f32 %v2881_v22 }
 0x2c9   : > { %2977 = vrot.lane.b32.xlu0 %v2959_v34, %s3629_s7  ;;  %v2927_v16 = vmax.f32 %v3517_v37, 0.0001  ;;  %v3519_v43 = vpop.eup %3518 }
 0x2ca   : > { %v2882_v56 = vadd.f32 1.0, %v3519_v43 }
 0x2cb   : > { %v2943_v4 = vmin.f32 %v2927_v16, 0.9999 }
 0x2cc   : > { %3526 = vrcp.f32 %v2882_v56 }
 0x2cd   : > { %v2960_v33 = vsel %vm2948_vm9, %v2943_v4, %v4726_v48  ;;  %v3521_v44 = vpop.eup %3520 }
 0x2ce   : > { %2979 = vrot.lane.b32.xlu1 %v2960_v33, %s3629_s7  ;;  %v2883_v31 = vadd.f32 1.0, %v3521_v44 }
 0x2d0   : > { %3528 = vrcp.f32 %v2883_v31 }
 0x2d1   : > { %v3523_v40 = vpop.eup %3522 }
 0x2d2   : > { %v2928_v17 = vmax.f32 %v3523_v40, 0.0001 }
 0x2d4   : > { %v2944_v30 = vmin.f32 %v2928_v17, 0.9999 }
 0x2d5   : > { %v3525_v54 = vpop.eup %3524 }
 0x2d6   : > { %v2961_v49 = vsel %vm2948_vm9, %v2944_v30, %v4730_v8  ;;  %v2929_v36 = vmax.f32 %v3525_v54, 0.0001 }
 0x2d7   : > { %2981 = vrot.lane.b32.xlu0 %v2961_v49, %s3629_s7 }
 0x2d8   : > { %v2945_v19 = vmin.f32 %v2929_v36, 0.9999 }
 0x2d9   : > { %v3527_v9 = vpop.eup %3526 }
 0x2da   : > { %v2962_v48 = vsel %vm2948_vm9, %v2945_v19, %v2807_v21  ;;  %v2930_v53 = vmax.f32 %v3527_v9, 0.0001  ;;  %v3347_v21 = vmul.f32 -1.442695, %v2756_v60 }
 0x2db   : > { %2983 = vrot.lane.b32.xlu1 %v2962_v48, %s3629_s7 }
 0x2dc   : > { %v2946_v51 = vmin.f32 %v2930_v53, 0.9999  ;;  %3530 = vpow2.f32 %v3347_v21 }
 0x2dd   : > { %v3529_v59 = vpop.eup %3528  ;;  %3532 = vpow2.f32 %v3348_v5 }
 0x2de   : > { %v2963_v52 = vsel %vm2948_vm9, %v2946_v51, %v2812_v10  ;;  %v2931_v13 = vmax.f32 %v3529_v59, 0.0001  ;;  %3534 = vpow2.f32 %v3349_v38 }
 0x2df   : > { %2985 = vrot.lane.b32.xlu0 %v2963_v52, %s3629_s7  ;;  %3536 = vpow2.f32 %v3350_v25 }
 0x2e0   : > { %v2947_v8 = vmin.f32 %v2931_v13, 0.9999 }
 0x2e2   : > { %v2964_v24 = vsel %vm2948_vm9, %v2947_v8, %v2815_v63 }
 0x2e3   : > { %2987 = vrot.lane.b32.xlu1 %v2964_v24, %s3629_s7  ;;  %s3365_s7 = sshll.u32 %s4881_s26, 6 }
 0x2e4   : > { %s4805_s28 = scalar_lea.vmem %s4865_s5, %s3365_s7 }
 0x2e9   : > { %v3531_v0 = vpop.eup %3530 }
 0x2ea   : > { %v2868_v50 = vadd.f32 1.0, %v3531_v0  ;;  %v3533_v10 = vpop.eup %3532 }
 0x2eb   : > { %v2869_v15 = vadd.f32 1.0, %v3533_v10  ;;  %v3535_v26 = vpop.eup %3534 }
 0x2ec   : > { %3538 = vrcp.f32 %v2868_v50  ;;  %v2870_v1 = vadd.f32 1.0, %v3535_v26  ;;  %v3537_v41 = vpop.eup %3536 }
 0x2ed   : > { %3540 = vrcp.f32 %v2869_v15  ;;  %v2871_v63 = vadd.f32 1.0, %v3537_v41 }
 0x2ee   : > { %3542 = vpow2.f32 %v3351_v57 }
 0x2ef   : > { %3544 = vpow2.f32 %v3352_v39 }
 0x2f0   : > { %3546 = vrcp.f32 %v2870_v1 }
 0x2f1   : > { %3548 = vpow2.f32 %v3353_v12 }
 0x2f2   : > { %3550 = vrcp.f32 %v2871_v63 }
 0x2f3   : > { %3552 = vpow2.f32 %v3354_v6 }
 0x2f9   : > { %v3539_v20 = vpop.eup %3538 }
 0x2fa   : > { %v2916_v35 = vmax.f32 %v3539_v20, 0.0001  ;;  %v3541_v45 = vpop.eup %3540 }
 0x2fb   : > { %v3543_v58 = vpop.eup %3542  ;;  %v2917_v27 = vmax.f32 %v3541_v45, 0.0001 }
 0x2fc   : > { %v2932_v61 = vmin.f32 %v2916_v35, 0.9999  ;;  %v2872_v7 = vadd.f32 1.0, %v3543_v58  ;;  %v3545_v32 = vpop.eup %3544 }
 0x2fd   : > { %v2933_v46 = vmin.f32 %v2917_v27, 0.9999  ;;  %v3547_v23 = vpop.eup %3546  ;;  %v2873_v22 = vadd.f32 1.0, %v3545_v32 }
 0x2fe   : > { %v2949_v18 = vsel %vm2948_vm9, %v2932_v61, %v2756_v60  ;;  %3554 = vrcp.f32 %v2872_v7  ;;  %v3549_v37 = vpop.eup %3548  ;;  %v2918_v43 = vmax.f32 %v3547_v23, 0.0001 }
 0x2ff   : > { %v2950_v16 = vsel %vm2948_vm9, %v2933_v46, %v2759_v2  ;;  %v3551_v4 = vpop.eup %3550  ;;  %3556 = vrcp.f32 %v2873_v22  ;;  %v2874_v33 = vadd.f32 1.0, %v3549_v37 }
 0x300   : > { %v3553_v44 = vpop.eup %3552  ;;  %v2934_v31 = vmin.f32 %v2918_v43, 0.9999  ;;  %v2919_v40 = vmax.f32 %v3551_v4, 0.0001 }
 0x301   : > { %3558 = vrcp.f32 %v2874_v33  ;;  %v2875_v17 = vadd.f32 1.0, %v3553_v44 }
 0x302   : > { %v2951_v30 = vsel %vm2948_vm9, %v2934_v31, %v4773_v28  ;;  %v2935_v36 = vmin.f32 %v2919_v40, 0.9999 }
 0x303   : > { %3560 = vrcp.f32 %v2875_v17 }
 0x304   : > { %v2952_v48 = vsel %vm2948_vm9, %v2935_v36, %v4778_v3 }
 0x30b   : > { %v3555_v19 = vpop.eup %3554 }
 0x30c   : > { %v2920_v51 = vmax.f32 %v3555_v19, 0.0001  ;;  %v3557_v59 = vpop.eup %3556 }
 0x30d   : > { %v2921_v13 = vmax.f32 %v3557_v59, 0.0001 }
 0x30e   : > { %v2936_v52 = vmin.f32 %v2920_v51, 0.9999  ;;  %v3559_v8 = vpop.eup %3558 }
 0x30f   : > { %v2937_v21 = vmin.f32 %v2921_v13, 0.9999  ;;  %v2922_v2 = vmax.f32 %v3559_v8, 0.0001 }
 0x310   : > { %v2953_v24 = vsel %vm2948_vm9, %v2936_v52, %v4783_v47  ;;  %v3561_v5 = vpop.eup %3560 }
 0x311   : > { %v2954_v38 = vsel %vm2948_vm9, %v2937_v21, %v4788_v42  ;;  %v2938_v0 = vmin.f32 %v2922_v2, 0.9999  ;;  %v2923_v25 = vmax.f32 %v3561_v5, 0.0001 }
 0x313   : > { %v2955_v10 = vsel %vm2948_vm9, %v2938_v0, %v4793_v55  ;;  %v2939_v15 = vmin.f32 %v2923_v25, 0.9999 }
 0x315   : > { %v2956_v26 = vsel %vm2948_vm9, %v2939_v15, %v4798_v62 }
 0x32f   : > { %v2974_v29 = vpop.permute.xlu0 %2973 }
 0x330   : > { %v2997_v11 = vsel %vm737_vm7, %v2949_v18, %v2974_v29 }
 0x331   : > { %3005 = vst [vmem:[%s4805_s28] sm:$0xff] %v2997_v11 }
 0x333   : > { %v2976_v34 = vpop.permute.xlu1 %2975 }
 0x334   : > { %v2998_v56 = vsel %vm737_vm7, %v2950_v16, %v2976_v34 }
 0x335   : > { %3006 = vst [vmem:[%s4805_s28 + $0x8] sm:$0xff] %v2998_v56 }
 0x33b   : > { %v2978_v54 = vpop.permute.xlu0 %2977 }
 0x33c   : > { %v2999_v49 = vsel %vm737_vm7, %v2951_v30, %v2978_v54 }
 0x33d   : > { %3007 = vst [vmem:[%s4805_s28 + $0x10] sm:$0xff] %v2999_v49 }
 0x340   : > { %v2980_v9 = vpop.permute.xlu1 %2979 }
 0x341   : > { %v3000_v53 = vsel %vm737_vm7, %v2952_v48, %v2980_v9 }
 0x342   : > { %3008 = vst [vmem:[%s4805_s28 + $0x18] sm:$0xff] %v3000_v53 }
 0x349   : > { %v2982_v60 = vpop.permute.xlu0 %2981 }
 0x34a   : > { %v3001_v28 = vsel %vm737_vm7, %v2953_v24, %v2982_v60 }
 0x34b   : > { %3009 = vst [vmem:[%s4805_s28 + $0x20] sm:$0xff] %v3001_v28 }
 0x34d   : > { %v2984_v3 = vpop.permute.xlu1 %2983 }
 0x34e   : > { %v3002_v50 = vsel %vm737_vm7, %v2954_v38, %v2984_v3 }
 0x34f   : > { %3010 = vst [vmem:[%s4805_s28 + $0x28] sm:$0xff] %v3002_v50 }
 0x351   : > { %v2986_v47 = vpop.permute.xlu0 %2985 }
 0x352   : > { %v3003_v57 = vsel %vm737_vm7, %v2955_v10, %v2986_v47 }
 0x353   : > { %3011 = vst [vmem:[%s4805_s28 + $0x30] sm:$0xff] %v3003_v57 }
 0x355   : > { %v2988_v42 = vpop.permute.xlu1 %2987 }
 0x356   : > { %v3004_v39 = vsel %vm737_vm7, %v2956_v26, %v2988_v42 }
 0x357   : > { %3012 = vst [vmem:[%s4805_s28 + $0x38] sm:$0xff] %v3004_v39 }
 0x358 PF: > { %s15_s22 = sadd.s32 1, %s3626_s22   ;;  %s4870_s18 = smov %s3618_s20 }
 0x359   : > { %p12_p6 = scmp.ge.s32.totalorder %s15_s22, 6   ;;  %s4871_s19 = smov %s3622_s21 }
 0x35a   : > { %s4872_s20 = smov %s4875_s23  ;;  %s4873_s21 = smov %s4879_s24 }
 0x35b   :  { %14 = sbr.rel (!%p12_p6) target bundleno = 3 (0x3), region = 74 }

</bundles_post_ra>
